<compile_context>
chip_gen: v7x
topology: tpu7x:2x2x1
jax: 0.10.0
libtpu: 0.0.40
codegen_flags: <defaults>
</compile_context>

<pallas_src>
import functools
import math

import jax
import jax.numpy as jnp
import numpy as np
from jax.experimental import pallas as pl
from jax.experimental.pallas import tpu as pltpu


_LOG2 = math.log(2.0)


def _lse2(a, b):
    """logsumexp of two arrays: max(a,b) + log(1 + exp(-|a-b|)).

    Algebraically identical to m + log(exp(a-m) + exp(b-m)) but with a single
    exp (one EUP op instead of two).
    """
    m = jnp.maximum(a, b)
    return m + jnp.log(1.0 + jnp.exp(-jnp.abs(a - b)))


def _seq_loss_kernel(*refs, n_pred, max_flow, var_min, var_max,
                     need_tail_mask, s_rows):
    gt_ref, valid_ref = refs[0], refs[1]
    flow_refs = refs[2:2 + n_pred]
    info_refs = refs[2 + n_pred:2 + 2 * n_pred]
    out_ref = refs[-1]

    # Ground truth / validity: computed once per pixel tile, shared by all
    # N predictions.  Every slab below is (R, 128) f32 -> full (8,128) vregs.
    gtx = gt_ref[0].astype(jnp.float32)
    gty = gt_ref[1].astype(jnp.float32)
    vraw = valid_ref[...].astype(jnp.float32)

    mag = jnp.sqrt(gtx * gtx + gty * gty)
    valid = jnp.logical_and(vraw >= 0.5, mag < max_flow)

    if need_tail_mask:
        # Last row-tile may extend past S; mask out-of-bounds rows so padded
        # (garbage) input never contributes to any sum.
        r_tile = gtx.shape[0]
        row = (jax.lax.broadcasted_iota(jnp.int32, gtx.shape, 0)
               + pl.program_id(1) * r_tile)
        valid = jnp.logical_and(valid, row < s_rows)

    validf = valid.astype(jnp.float32)

    # Row 0: valid count, row 1: masked |gt| sum (lane-partials).
    out_ref[0:1, :] = jnp.sum(validf, axis=0, keepdims=True)
    out_ref[1:2, :] = jnp.sum(jnp.where(valid, mag, 0.0), axis=0, keepdims=True)

    for i in range(n_pred):
        fpx = flow_refs[i][0].astype(jnp.float32)
        fpy = flow_refs[i][1].astype(jnp.float32)
        info = info_refs[i]
        w0 = info[0].astype(jnp.float32)
        w1 = info[1].astype(jnp.float32)
        log_b0 = jnp.clip(info[2].astype(jnp.float32), 0.0, var_max)
        log_b1 = jnp.clip(info[3].astype(jnp.float32), var_min, 0.0)

        fdx = gtx - fpx
        fdy = gty - fpy
        epe = jnp.sqrt(fdx * fdx + fdy * fdy)

        lse_w = _lse2(w0, w1)
        t10 = w0 - jnp.float32(_LOG2) - log_b0
        t11 = w1 - jnp.float32(_LOG2) - log_b1
        ib0 = jnp.exp(-log_b0)
        ib1 = jnp.exp(-log_b1)

        afx = jnp.abs(fdx)
        afy = jnp.abs(fdy)
        # nf[k] = lse_w - logsumexp_j(term1[j] - |fd[k]| * exp(-log_b[j]))
        nf_x = lse_w - _lse2(t10 - afx * ib0, t11 - afx * ib1)
        nf_y = lse_w - _lse2(t10 - afy * ib0, t11 - afy * ib1)

        fm_x = jnp.logical_and(valid, jnp.isfinite(nf_x))
        fm_y = jnp.logical_and(valid, jnp.isfinite(nf_y))

        base = 2 + 3 * i
        out_ref[base:base + 1, :] = jnp.sum(
            jnp.where(valid, epe, 0.0), axis=0, keepdims=True)
        # where(mask, nf, 0) instead of mask*nf so NaN/Inf nf never poisons
        # the sum (the whole point of the finite mask).
        out_ref[base + 1:base + 2, :] = jnp.sum(
            jnp.where(fm_x, nf_x, 0.0) + jnp.where(fm_y, nf_y, 0.0),
            axis=0, keepdims=True)
        out_ref[base + 2:base + 3, :] = jnp.sum(
            fm_x.astype(jnp.float32) + fm_y.astype(jnp.float32),
            axis=0, keepdims=True)


def _pick_row_tile(s, desired, min_tiles=1):
    """Pick the sublane-row tile R and whether a tail mask is needed.

    Returns (R, need_tail_mask).  R is a multiple of 8 whenever it is not the
    whole axis; if S has no suitable divisor we use a cdiv grid with an
    in-kernel tail mask instead of one giant whole-axis block.
    """
    desired = max(8, (desired // 8) * 8)
    if min_tiles > 1 and s > 8:
        # Megacore balance (v7x, B == 1): aim for at least `min_tiles` tiles.
        desired = min(desired, max(8, ((s // min_tiles) // 8) * 8))
    if s <= desired:
        return s, False                 # whole axis = one (legal) block
    for r in range(desired, 7, -8):
        if r % 8 == 0 and s % r == 0:
            return r, False             # clean divisor
    return desired, True                # cdiv grid + in-kernel tail mask


def sequence_loss(flow_preds, info_preds, flow_gt, valid,
                  gamma=0.9, max_flow=400.0, var_min=0.0, var_max=10.0,
                  rows_per_tile=256):
    n_pred = len(flow_preds)
    B, _, H, W = flow_gt.shape
    HW = H * W
    # TODO(synk): no remainder path for H*W not a multiple of 128 (lane width).
    assert HW % 128 == 0, "H*W must be a multiple of 128"
    S = HW // 128

    # Cap R so the double-buffered f32-worst-case input footprint stays under
    # ~12 MiB (safe for v5e's 16 MiB scoped-VMEM default, generous on v6e/v7x).
    bytes_per_row = (3 + 6 * n_pred) * 128 * 4
    max_r = max(8, (((12 << 20) // (2 * bytes_per_row)) // 8) * 8)
    R, need_tail_mask = _pick_row_tile(
        S, min(rows_per_tile, max_r), min_tiles=2 if B == 1 else 1)
    T = pl.cdiv(S, R)
    ROWS = 3 * n_pred + 2

    # Free (copy-less) reshapes only; keep native dtype (cast happens on-chip).
    def view(x):
        return x.reshape(x.shape[0], x.shape[1], S, 128)

    gt = view(flow_gt)
    if valid.ndim == 3:
        v = valid
    elif valid.ndim == 4 and valid.shape[1] == 1:
        v = valid[:, 0]
    else:
        raise ValueError(
            f"Expected valid shape [B,H,W] or [B,1,H,W], got {valid.shape}")
    if v.dtype == jnp.bool_ or not jnp.issubdtype(v.dtype, jnp.floating):
        v = v.astype(jnp.float32)       # bool/int refs are awkward; tiny operand
    v = v.reshape(B, 1, S, 128)

    flows = [view(f) for f in flow_preds]
    infos = [view(f) for f in info_preds]

    flow_spec = pl.BlockSpec((None, 2, R, 128), lambda b, t: (b, 0, t, 0))
    info_spec = pl.BlockSpec((None, 4, R, 128), lambda b, t: (b, 0, t, 0))
    valid_spec = pl.BlockSpec((None, None, R, 128), lambda b, t: (b, 0, t, 0))
    out_spec = pl.BlockSpec((None, None, ROWS, 128), lambda b, t: (b, t, 0, 0))

    kernel = functools.partial(
        _seq_loss_kernel, n_pred=n_pred, max_flow=float(max_flow),
        var_min=float(var_min), var_max=float(var_max),
        need_tail_mask=need_tail_mask, s_rows=S)

    stats = pl.pallas_call(
        kernel,
        out_shape=jax.ShapeDtypeStruct((B, T, ROWS, 128), jnp.float32),
        grid=(B, T),
        in_specs=[flow_spec, valid_spec]
                 + [flow_spec] * n_pred + [info_spec] * n_pred,
        out_specs=out_spec,
        compiler_params=pltpu.CompilerParams(
            dimension_semantics=("parallel", "parallel")),
    )(gt, v, *flows, *infos)

    # Tiny JAX glue: reduce lane partials over batch / tiles / lanes.
    s = jnp.sum(stats, axis=(0, 1, 3))          # (ROWS,)
    valid_cnt = s[0]
    mag_sum = s[1]
    epe_sum = s[2::3]                           # (N,)
    nf_sum = s[3::3]                            # (N,)
    mask_cnt = s[4::3]                          # (N,)

    epe_all = jnp.where(valid_cnt > 0, epe_sum / valid_cnt, 0.0)
    gamma_w = jnp.asarray([gamma ** (n_pred - i - 1) for i in range(n_pred)],
                          jnp.float32)
    flow_loss = jnp.sum(gamma_w * nf_sum / (mask_cnt + 1e-10))
    mag_mean = jnp.where(valid_cnt > 0, mag_sum / valid_cnt, 0.0)

    # TODO(synk): PyTorch returns metrics as Python floats via .item(); here
    # they are returned as JAX scalars.
    metrics = {"epe": epe_all[-1], "epe_all": epe_all, "mag": mag_mean}
    return flow_loss, metrics


def sequence_loss_ref(flow_preds, info_preds, flow_gt, valid,
                      gamma, max_flow, var_min, var_max):
    """Plain-JAX reference mirroring the PyTorch semantics."""
    n = len(flow_preds)
    if valid.ndim == 3:
        valid = valid[:, None]
    mag = jnp.sqrt(jnp.sum(flow_gt ** 2, axis=1, keepdims=True))
    valid = (valid >= 0.5) & (mag < max_flow)
    epe_all = []
    for i in range(n):
        epe = jnp.sqrt(jnp.sum((flow_gt - flow_preds[i]) ** 2, axis=1))
        vm = valid[:, 0]
        cnt = jnp.sum(vm)
        epe_all.append(jnp.where(cnt > 0,
                                 jnp.sum(jnp.where(vm, epe, 0.0)) / cnt, 0.0))
    flow_loss = 0.0
    for i in range(n):
        raw_b = info_preds[i][:, 2:]
        weight = info_preds[i][:, :2]
        log_b = jnp.stack([jnp.clip(raw_b[:, 0], 0.0, var_max),
                           jnp.clip(raw_b[:, 1], var_min, 0.0)], axis=1)
        term2 = (jnp.abs(flow_gt - flow_preds[i])[:, :, None]
                 * jnp.exp(-log_b)[:, None])
        term1 = weight - _LOG2 - log_b
        nf = (jax.scipy.special.logsumexp(weight, axis=1, keepdims=True)
              - jax.scipy.special.logsumexp(term1[:, None] - term2, axis=2))
        fm = valid & ~jnp.isnan(nf) & ~jnp.isinf(nf)
        iw = gamma ** (n - i - 1)
        flow_loss += (iw * jnp.sum(jnp.where(fm, nf, 0.0))
                      / (jnp.sum(fm.astype(jnp.float32)) + 1e-10))
    vcnt = jnp.sum(valid)
    mag_mean = jnp.where(vcnt > 0,
                         jnp.sum(jnp.where(valid, mag, 0.0)) / vcnt, 0.0)
    return flow_loss, {"epe": epe_all[-1], "epe_all": jnp.stack(epe_all),
                       "mag": mag_mean}


if __name__ == "__main__":
    key = jax.random.PRNGKey(0)
    B, H, W, N = 2, 32, 32, 3
    k1, k2, k3, k4 = jax.random.split(key, 4)
    flow_gt = 5.0 * jax.random.normal(k1, (B, 2, H, W), jnp.float32)
    valid = jax.random.uniform(k2, (B, H, W), jnp.float32)
    flow_preds = [flow_gt + jax.random.normal(fk, (B, 2, H, W), jnp.float32)
                  for fk in jax.random.split(k3, N)]
    info_preds = [jax.random.normal(ik, (B, 4, H, W), jnp.float32)
                  for ik in jax.random.split(k4, N)]

    loss, metrics = sequence_loss(flow_preds, info_preds, flow_gt, valid)
    loss = jax.block_until_ready(loss)

    ref_loss, ref_metrics = sequence_loss_ref(
        flow_preds, info_preds, flow_gt, valid, 0.9, 400.0, 0.0, 10.0)

    assert np.allclose(float(loss), float(ref_loss), rtol=1e-4, atol=1e-5), \
        (float(loss), float(ref_loss))
    assert np.allclose(np.asarray(metrics["epe_all"]),
                       np.asarray(ref_metrics["epe_all"]),
                       rtol=1e-4, atol=1e-5)
    assert np.allclose(float(metrics["mag"]), float(ref_metrics["mag"]),
                       rtol=1e-4, atol=1e-5)
    print("KERNEL_OK")
</pallas_src>

<mosaic_0001>
module attributes {stable_mosaic.version = 11 : i64} {
  func.func @_seq_loss_kernel(%arg0: i32, %arg1: i32, %arg2: memref<1x2x8x128xf32, #tpu.memory_space<vmem>>, %arg3: memref<1x1x8x128xf32, #tpu.memory_space<vmem>>, %arg4: memref<1x2x8x128xf32, #tpu.memory_space<vmem>>, %arg5: memref<1x2x8x128xf32, #tpu.memory_space<vmem>>, %arg6: memref<1x2x8x128xf32, #tpu.memory_space<vmem>>, %arg7: memref<1x4x8x128xf32, #tpu.memory_space<vmem>>, %arg8: memref<1x4x8x128xf32, #tpu.memory_space<vmem>>, %arg9: memref<1x4x8x128xf32, #tpu.memory_space<vmem>>, %arg10: memref<1x1x11x128xf32, #tpu.memory_space<vmem>>) attributes {dimension_semantics = [#tpu.dimension_semantics<parallel>, #tpu.dimension_semantics<parallel>], iteration_bounds = array<i64: 2, 1>, scalar_prefetch = 0 : i64, scratch_operands = 0 : i64, tpu.core_type = #tpu.core_type<tc>, window_params = [{transform_indices = @transform_0, window_bounds = array<i64: 1, 2, 8, 128>}, {transform_indices = @transform_1, window_bounds = array<i64: 1, 1, 8, 128>}, {transform_indices = @transform_2, window_bounds = array<i64: 1, 2, 8, 128>}, {transform_indices = @transform_3, window_bounds = array<i64: 1, 2, 8, 128>}, {transform_indices = @transform_4, window_bounds = array<i64: 1, 2, 8, 128>}, {transform_indices = @transform_5, window_bounds = array<i64: 1, 4, 8, 128>}, {transform_indices = @transform_6, window_bounds = array<i64: 1, 4, 8, 128>}, {transform_indices = @transform_7, window_bounds = array<i64: 1, 4, 8, 128>}, {transform_indices = @transform_8, window_bounds = array<i64: 1, 1, 11, 128>}]} {
    %c0 = arith.constant 0 : index
    %c0_0 = arith.constant 0 : index
    %c0_1 = arith.constant 0 : index
    %c0_2 = arith.constant 0 : index
    %0 = vector.load %arg2[%c0, %c0_0, %c0_1, %c0_2] : memref<1x2x8x128xf32, #tpu.memory_space<vmem>>, vector<1x1x8x128xf32>
    %1 = vector.shape_cast %0 : vector<1x1x8x128xf32> to vector<8x128xf32>
    %c0_3 = arith.constant 0 : index
    %c1 = arith.constant 1 : index
    %c0_4 = arith.constant 0 : index
    %c0_5 = arith.constant 0 : index
    %2 = vector.load %arg2[%c0_3, %c1, %c0_4, %c0_5] : memref<1x2x8x128xf32, #tpu.memory_space<vmem>>, vector<1x1x8x128xf32>
    %3 = vector.shape_cast %2 : vector<1x1x8x128xf32> to vector<8x128xf32>
    %c0_6 = arith.constant 0 : index
    %c0_7 = arith.constant 0 : index
    %c0_8 = arith.constant 0 : index
    %c0_9 = arith.constant 0 : index
    %4 = vector.load %arg3[%c0_6, %c0_7, %c0_8, %c0_9] : memref<1x1x8x128xf32, #tpu.memory_space<vmem>>, vector<1x1x8x128xf32>
    %5 = vector.shape_cast %4 : vector<1x1x8x128xf32> to vector<8x128xf32>
    %6 = arith.mulf %1, %1 : vector<8x128xf32>
    %7 = arith.mulf %3, %3 : vector<8x128xf32>
    %8 = arith.addf %6, %7 : vector<8x128xf32>
    %9 = math.sqrt %8 : vector<8x128xf32>
    %cst = arith.constant 5.000000e-01 : f32
    %10 = vector.broadcast %cst : f32 to vector<8x128xf32>
    %11 = arith.cmpf oge, %5, %10 : vector<8x128xf32>
    %cst_10 = arith.constant 4.000000e+02 : f32
    %12 = vector.broadcast %cst_10 : f32 to vector<8x128xf32>
    %13 = arith.cmpf olt, %9, %12 : vector<8x128xf32>
    %14 = arith.andi %11, %13 : vector<8x128xi1>
    %15 = arith.extui %14 : vector<8x128xi1> to vector<8x128xi32>
    %16 = arith.sitofp %15 : vector<8x128xi32> to vector<8x128xf32>
    %cst_11 = arith.constant dense<0.000000e+00> : vector<128xf32>
    %17 = vector.multi_reduction <add>, %16, %cst_11 [0] : vector<8x128xf32> to vector<128xf32>
    %18 = vector.shape_cast %17 : vector<128xf32> to vector<1x128xf32>
    %c0_12 = arith.constant 0 : index
    %c0_13 = arith.constant 0 : index
    %c0_14 = arith.constant 0 : index
    %c0_15 = arith.constant 0 : index
    %19 = vector.load %arg10[%c0_12, %c0_13, %c0_14, %c0_15] : memref<1x1x11x128xf32, #tpu.memory_space<vmem>>, vector<1x1x1x128xf32>
    %20 = vector.shape_cast %19 : vector<1x1x1x128xf32> to vector<1x128xf32>
    %21 = vector.shape_cast %18 : vector<1x128xf32> to vector<1x1x1x128xf32>
    tpu.vector_store %arg10[%c0_12, %c0_13, %c0_14, %c0_15], %21 {strides = array<i32>} : memref<1x1x11x128xf32, #tpu.memory_space<vmem>>, vector<1x1x1x128xf32>,
    %cst_16 = arith.constant 0.000000e+00 : f32
    %22 = vector.broadcast %cst_16 : f32 to vector<8x128xf32>
    %23 = arith.select %14, %9, %22 : vector<8x128xi1>, vector<8x128xf32>
    %cst_17 = arith.constant dense<0.000000e+00> : vector<128xf32>
    %24 = vector.multi_reduction <add>, %23, %cst_17 [0] : vector<8x128xf32> to vector<128xf32>
    %25 = vector.shape_cast %24 : vector<128xf32> to vector<1x128xf32>
    %c0_18 = arith.constant 0 : index
    %c0_19 = arith.constant 0 : index
    %c1_20 = arith.constant 1 : index
    %c0_21 = arith.constant 0 : index
    %26 = vector.load %arg10[%c0_18, %c0_19, %c1_20, %c0_21] : memref<1x1x11x128xf32, #tpu.memory_space<vmem>>, vector<1x1x1x128xf32>
    %27 = vector.shape_cast %26 : vector<1x1x1x128xf32> to vector<1x128xf32>
    %28 = vector.shape_cast %25 : vector<1x128xf32> to vector<1x1x1x128xf32>
    tpu.vector_store %arg10[%c0_18, %c0_19, %c1_20, %c0_21], %28 {strides = array<i32>} : memref<1x1x11x128xf32, #tpu.memory_space<vmem>>, vector<1x1x1x128xf32>,
    %c0_22 = arith.constant 0 : index
    %c0_23 = arith.constant 0 : index
    %c0_24 = arith.constant 0 : index
    %c0_25 = arith.constant 0 : index
    %29 = vector.load %arg4[%c0_22, %c0_23, %c0_24, %c0_25] : memref<1x2x8x128xf32, #tpu.memory_space<vmem>>, vector<1x1x8x128xf32>
    %30 = vector.shape_cast %29 : vector<1x1x8x128xf32> to vector<8x128xf32>
    %c0_26 = arith.constant 0 : index
    %c1_27 = arith.constant 1 : index
    %c0_28 = arith.constant 0 : index
    %c0_29 = arith.constant 0 : index
    %31 = vector.load %arg4[%c0_26, %c1_27, %c0_28, %c0_29] : memref<1x2x8x128xf32, #tpu.memory_space<vmem>>, vector<1x1x8x128xf32>
    %32 = vector.shape_cast %31 : vector<1x1x8x128xf32> to vector<8x128xf32>
    %c0_30 = arith.constant 0 : index
    %c0_31 = arith.constant 0 : index
    %c0_32 = arith.constant 0 : index
    %c0_33 = arith.constant 0 : index
    %33 = vector.load %arg7[%c0_30, %c0_31, %c0_32, %c0_33] : memref<1x4x8x128xf32, #tpu.memory_space<vmem>>, vector<1x1x8x128xf32>
    %34 = vector.shape_cast %33 : vector<1x1x8x128xf32> to vector<8x128xf32>
    %c0_34 = arith.constant 0 : index
    %c1_35 = arith.constant 1 : index
    %c0_36 = arith.constant 0 : index
    %c0_37 = arith.constant 0 : index
    %35 = vector.load %arg7[%c0_34, %c1_35, %c0_36, %c0_37] : memref<1x4x8x128xf32, #tpu.memory_space<vmem>>, vector<1x1x8x128xf32>
    %36 = vector.shape_cast %35 : vector<1x1x8x128xf32> to vector<8x128xf32>
    %c0_38 = arith.constant 0 : index
    %c2 = arith.constant 2 : index
    %c0_39 = arith.constant 0 : index
    %c0_40 = arith.constant 0 : index
    %37 = vector.load %arg7[%c0_38, %c2, %c0_39, %c0_40] : memref<1x4x8x128xf32, #tpu.memory_space<vmem>>, vector<1x1x8x128xf32>
    %38 = vector.shape_cast %37 : vector<1x1x8x128xf32> to vector<8x128xf32>
    %cst_41 = arith.constant 0.000000e+00 : f32
    %cst_42 = arith.constant 1.000000e+01 : f32
    %39 = vector.broadcast %cst_41 : f32 to vector<8x128xf32>
    %40 = arith.maximumf %39, %38 : vector<8x128xf32>
    %41 = vector.broadcast %cst_42 : f32 to vector<8x128xf32>
    %42 = arith.minimumf %41, %40 : vector<8x128xf32>
    %c0_43 = arith.constant 0 : index
    %c3 = arith.constant 3 : index
    %c0_44 = arith.constant 0 : index
    %c0_45 = arith.constant 0 : index
    %43 = vector.load %arg7[%c0_43, %c3, %c0_44, %c0_45] : memref<1x4x8x128xf32, #tpu.memory_space<vmem>>, vector<1x1x8x128xf32>
    %44 = vector.shape_cast %43 : vector<1x1x8x128xf32> to vector<8x128xf32>
    %cst_46 = arith.constant 0.000000e+00 : f32
    %cst_47 = arith.constant 0.000000e+00 : f32
    %45 = vector.broadcast %cst_46 : f32 to vector<8x128xf32>
    %46 = arith.maximumf %45, %44 : vector<8x128xf32>
    %47 = vector.broadcast %cst_47 : f32 to vector<8x128xf32>
    %48 = arith.minimumf %47, %46 : vector<8x128xf32>
    %49 = arith.subf %1, %30 : vector<8x128xf32>
    %50 = arith.subf %3, %32 : vector<8x128xf32>
    %51 = arith.mulf %49, %49 : vector<8x128xf32>
    %52 = arith.mulf %50, %50 : vector<8x128xf32>
    %53 = arith.addf %51, %52 : vector<8x128xf32>
    %54 = math.sqrt %53 : vector<8x128xf32>
    %55 = arith.maximumf %34, %36 : vector<8x128xf32>
    %56 = arith.subf %34, %36 : vector<8x128xf32>
    %57 = math.absf %56 : vector<8x128xf32>
    %cst_48 = arith.constant 0.000000e+00 : f32
    %58 = vector.broadcast %cst_48 : f32 to vector<8x128xf32>
    %59 = arith.subf %58, %57 : vector<8x128xf32>
    %60 = math.exp %59 : vector<8x128xf32>
    %cst_49 = arith.constant 1.000000e+00 : f32
    %61 = vector.broadcast %cst_49 : f32 to vector<8x128xf32>
    %62 = arith.addf %61, %60 : vector<8x128xf32>
    %63 = math.log %62 : vector<8x128xf32>
    %64 = arith.addf %55, %63 : vector<8x128xf32>
    %cst_50 = arith.constant 0.693147182 : f32
    %65 = vector.broadcast %cst_50 : f32 to vector<8x128xf32>
    %66 = arith.subf %34, %65 : vector<8x128xf32>
    %67 = arith.subf %66, %42 : vector<8x128xf32>
    %cst_51 = arith.constant 0.693147182 : f32
    %68 = vector.broadcast %cst_51 : f32 to vector<8x128xf32>
    %69 = arith.subf %36, %68 : vector<8x128xf32>
    %70 = arith.subf %69, %48 : vector<8x128xf32>
    %cst_52 = arith.constant 0.000000e+00 : f32
    %71 = vector.broadcast %cst_52 : f32 to vector<8x128xf32>
    %72 = arith.subf %71, %42 : vector<8x128xf32>
    %73 = math.exp %72 : vector<8x128xf32>
    %cst_53 = arith.constant 0.000000e+00 : f32
    %74 = vector.broadcast %cst_53 : f32 to vector<8x128xf32>
    %75 = arith.subf %74, %48 : vector<8x128xf32>
    %76 = math.exp %75 : vector<8x128xf32>
    %77 = math.absf %49 : vector<8x128xf32>
    %78 = math.absf %50 : vector<8x128xf32>
    %79 = arith.mulf %77, %73 : vector<8x128xf32>
    %80 = arith.subf %67, %79 : vector<8x128xf32>
    %81 = arith.mulf %77, %76 : vector<8x128xf32>
    %82 = arith.subf %70, %81 : vector<8x128xf32>
    %83 = arith.maximumf %80, %82 : vector<8x128xf32>
    %84 = arith.subf %80, %82 : vector<8x128xf32>
    %85 = math.absf %84 : vector<8x128xf32>
    %cst_54 = arith.constant 0.000000e+00 : f32
    %86 = vector.broadcast %cst_54 : f32 to vector<8x128xf32>
    %87 = arith.subf %86, %85 : vector<8x128xf32>
    %88 = math.exp %87 : vector<8x128xf32>
    %cst_55 = arith.constant 1.000000e+00 : f32
    %89 = vector.broadcast %cst_55 : f32 to vector<8x128xf32>
    %90 = arith.addf %89, %88 : vector<8x128xf32>
    %91 = math.log %90 : vector<8x128xf32>
    %92 = arith.addf %83, %91 : vector<8x128xf32>
    %93 = arith.subf %64, %92 : vector<8x128xf32>
    %94 = arith.mulf %78, %73 : vector<8x128xf32>
    %95 = arith.subf %67, %94 : vector<8x128xf32>
    %96 = arith.mulf %78, %76 : vector<8x128xf32>
    %97 = arith.subf %70, %96 : vector<8x128xf32>
    %98 = arith.maximumf %95, %97 : vector<8x128xf32>
    %99 = arith.subf %95, %97 : vector<8x128xf32>
    %100 = math.absf %99 : vector<8x128xf32>
    %cst_56 = arith.constant 0.000000e+00 : f32
    %101 = vector.broadcast %cst_56 : f32 to vector<8x128xf32>
    %102 = arith.subf %101, %100 : vector<8x128xf32>
    %103 = math.exp %102 : vector<8x128xf32>
    %cst_57 = arith.constant 1.000000e+00 : f32
    %104 = vector.broadcast %cst_57 : f32 to vector<8x128xf32>
    %105 = arith.addf %104, %103 : vector<8x128xf32>
    %106 = math.log %105 : vector<8x128xf32>
    %107 = arith.addf %98, %106 : vector<8x128xf32>
    %108 = arith.subf %64, %107 : vector<8x128xf32>
    %109 = tpu.weird %93 : vector<8x128xf32> -> vector<8x128xi1>
    %cst_58 = arith.constant dense<true> : vector<8x128xi1>
    %110 = arith.xori %109, %cst_58 : vector<8x128xi1>
    %111 = arith.andi %14, %110 : vector<8x128xi1>
    %112 = tpu.weird %108 : vector<8x128xf32> -> vector<8x128xi1>
    %cst_59 = arith.constant dense<true> : vector<8x128xi1>
    %113 = arith.xori %112, %cst_59 : vector<8x128xi1>
    %114 = arith.andi %14, %113 : vector<8x128xi1>
    %cst_60 = arith.constant 0.000000e+00 : f32
    %115 = vector.broadcast %cst_60 : f32 to vector<8x128xf32>
    %116 = arith.select %14, %54, %115 : vector<8x128xi1>, vector<8x128xf32>
    %cst_61 = arith.constant dense<0.000000e+00> : vector<128xf32>
    %117 = vector.multi_reduction <add>, %116, %cst_61 [0] : vector<8x128xf32> to vector<128xf32>
    %118 = vector.shape_cast %117 : vector<128xf32> to vector<1x128xf32>
    %c0_62 = arith.constant 0 : index
    %c0_63 = arith.constant 0 : index
    %c2_64 = arith.constant 2 : index
    %c0_65 = arith.constant 0 : index
    %119 = vector.load %arg10[%c0_62, %c0_63, %c2_64, %c0_65] : memref<1x1x11x128xf32, #tpu.memory_space<vmem>>, vector<1x1x1x128xf32>
    %120 = vector.shape_cast %119 : vector<1x1x1x128xf32> to vector<1x128xf32>
    %121 = vector.shape_cast %118 : vector<1x128xf32> to vector<1x1x1x128xf32>
    tpu.vector_store %arg10[%c0_62, %c0_63, %c2_64, %c0_65], %121 {strides = array<i32>} : memref<1x1x11x128xf32, #tpu.memory_space<vmem>>, vector<1x1x1x128xf32>,
    %cst_66 = arith.constant 0.000000e+00 : f32
    %122 = vector.broadcast %cst_66 : f32 to vector<8x128xf32>
    %123 = arith.select %111, %93, %122 : vector<8x128xi1>, vector<8x128xf32>
    %cst_67 = arith.constant 0.000000e+00 : f32
    %124 = vector.broadcast %cst_67 : f32 to vector<8x128xf32>
    %125 = arith.select %114, %108, %124 : vector<8x128xi1>, vector<8x128xf32>
    %126 = arith.addf %123, %125 : vector<8x128xf32>
    %cst_68 = arith.constant dense<0.000000e+00> : vector<128xf32>
    %127 = vector.multi_reduction <add>, %126, %cst_68 [0] : vector<8x128xf32> to vector<128xf32>
    %128 = vector.shape_cast %127 : vector<128xf32> to vector<1x128xf32>
    %c0_69 = arith.constant 0 : index
    %c0_70 = arith.constant 0 : index
    %c3_71 = arith.constant 3 : index
    %c0_72 = arith.constant 0 : index
    %129 = vector.load %arg10[%c0_69, %c0_70, %c3_71, %c0_72] : memref<1x1x11x128xf32, #tpu.memory_space<vmem>>, vector<1x1x1x128xf32>
    %130 = vector.shape_cast %129 : vector<1x1x1x128xf32> to vector<1x128xf32>
    %131 = vector.shape_cast %128 : vector<1x128xf32> to vector<1x1x1x128xf32>
    tpu.vector_store %arg10[%c0_69, %c0_70, %c3_71, %c0_72], %131 {strides = array<i32>} : memref<1x1x11x128xf32, #tpu.memory_space<vmem>>, vector<1x1x1x128xf32>,
    %132 = arith.extui %111 : vector<8x128xi1> to vector<8x128xi32>
    %133 = arith.sitofp %132 : vector<8x128xi32> to vector<8x128xf32>
    %134 = arith.extui %114 : vector<8x128xi1> to vector<8x128xi32>
    %135 = arith.sitofp %134 : vector<8x128xi32> to vector<8x128xf32>
    %136 = arith.addf %133, %135 : vector<8x128xf32>
    %cst_73 = arith.constant dense<0.000000e+00> : vector<128xf32>
    %137 = vector.multi_reduction <add>, %136, %cst_73 [0] : vector<8x128xf32> to vector<128xf32>
    %138 = vector.shape_cast %137 : vector<128xf32> to vector<1x128xf32>
    %c0_74 = arith.constant 0 : index
    %c0_75 = arith.constant 0 : index
    %c4 = arith.constant 4 : index
    %c0_76 = arith.constant 0 : index
    %139 = vector.load %arg10[%c0_74, %c0_75, %c4, %c0_76] : memref<1x1x11x128xf32, #tpu.memory_space<vmem>>, vector<1x1x1x128xf32>
    %140 = vector.shape_cast %139 : vector<1x1x1x128xf32> to vector<1x128xf32>
    %141 = vector.shape_cast %138 : vector<1x128xf32> to vector<1x1x1x128xf32>
    tpu.vector_store %arg10[%c0_74, %c0_75, %c4, %c0_76], %141 {strides = array<i32>} : memref<1x1x11x128xf32, #tpu.memory_space<vmem>>, vector<1x1x1x128xf32>,
    %c0_77 = arith.constant 0 : index
    %c0_78 = arith.constant 0 : index
    %c0_79 = arith.constant 0 : index
    %c0_80 = arith.constant 0 : index
    %142 = vector.load %arg5[%c0_77, %c0_78, %c0_79, %c0_80] : memref<1x2x8x128xf32, #tpu.memory_space<vmem>>, vector<1x1x8x128xf32>
    %143 = vector.shape_cast %142 : vector<1x1x8x128xf32> to vector<8x128xf32>
    %c0_81 = arith.constant 0 : index
    %c1_82 = arith.constant 1 : index
    %c0_83 = arith.constant 0 : index
    %c0_84 = arith.constant 0 : index
    %144 = vector.load %arg5[%c0_81, %c1_82, %c0_83, %c0_84] : memref<1x2x8x128xf32, #tpu.memory_space<vmem>>, vector<1x1x8x128xf32>
    %145 = vector.shape_cast %144 : vector<1x1x8x128xf32> to vector<8x128xf32>
    %c0_85 = arith.constant 0 : index
    %c0_86 = arith.constant 0 : index
    %c0_87 = arith.constant 0 : index
    %c0_88 = arith.constant 0 : index
    %146 = vector.load %arg8[%c0_85, %c0_86, %c0_87, %c0_88] : memref<1x4x8x128xf32, #tpu.memory_space<vmem>>, vector<1x1x8x128xf32>
    %147 = vector.shape_cast %146 : vector<1x1x8x128xf32> to vector<8x128xf32>
    %c0_89 = arith.constant 0 : index
    %c1_90 = arith.constant 1 : index
    %c0_91 = arith.constant 0 : index
    %c0_92 = arith.constant 0 : index
    %148 = vector.load %arg8[%c0_89, %c1_90, %c0_91, %c0_92] : memref<1x4x8x128xf32, #tpu.memory_space<vmem>>, vector<1x1x8x128xf32>
    %149 = vector.shape_cast %148 : vector<1x1x8x128xf32> to vector<8x128xf32>
    %c0_93 = arith.constant 0 : index
    %c2_94 = arith.constant 2 : index
    %c0_95 = arith.constant 0 : index
    %c0_96 = arith.constant 0 : index
    %150 = vector.load %arg8[%c0_93, %c2_94, %c0_95, %c0_96] : memref<1x4x8x128xf32, #tpu.memory_space<vmem>>, vector<1x1x8x128xf32>
    %151 = vector.shape_cast %150 : vector<1x1x8x128xf32> to vector<8x128xf32>
    %cst_97 = arith.constant 0.000000e+00 : f32
    %cst_98 = arith.constant 1.000000e+01 : f32
    %152 = vector.broadcast %cst_97 : f32 to vector<8x128xf32>
    %153 = arith.maximumf %152, %151 : vector<8x128xf32>
    %154 = vector.broadcast %cst_98 : f32 to vector<8x128xf32>
    %155 = arith.minimumf %154, %153 : vector<8x128xf32>
    %c0_99 = arith.constant 0 : index
    %c3_100 = arith.constant 3 : index
    %c0_101 = arith.constant 0 : index
    %c0_102 = arith.constant 0 : index
    %156 = vector.load %arg8[%c0_99, %c3_100, %c0_101, %c0_102] : memref<1x4x8x128xf32, #tpu.memory_space<vmem>>, vector<1x1x8x128xf32>
    %157 = vector.shape_cast %156 : vector<1x1x8x128xf32> to vector<8x128xf32>
    %cst_103 = arith.constant 0.000000e+00 : f32
    %cst_104 = arith.constant 0.000000e+00 : f32
    %158 = vector.broadcast %cst_103 : f32 to vector<8x128xf32>
    %159 = arith.maximumf %158, %157 : vector<8x128xf32>
    %160 = vector.broadcast %cst_104 : f32 to vector<8x128xf32>
    %161 = arith.minimumf %160, %159 : vector<8x128xf32>
    %162 = arith.subf %1, %143 : vector<8x128xf32>
    %163 = arith.subf %3, %145 : vector<8x128xf32>
    %164 = arith.mulf %162, %162 : vector<8x128xf32>
    %165 = arith.mulf %163, %163 : vector<8x128xf32>
    %166 = arith.addf %164, %165 : vector<8x128xf32>
    %167 = math.sqrt %166 : vector<8x128xf32>
    %168 = arith.maximumf %147, %149 : vector<8x128xf32>
    %169 = arith.subf %147, %149 : vector<8x128xf32>
    %170 = math.absf %169 : vector<8x128xf32>
    %cst_105 = arith.constant 0.000000e+00 : f32
    %171 = vector.broadcast %cst_105 : f32 to vector<8x128xf32>
    %172 = arith.subf %171, %170 : vector<8x128xf32>
    %173 = math.exp %172 : vector<8x128xf32>
    %cst_106 = arith.constant 1.000000e+00 : f32
    %174 = vector.broadcast %cst_106 : f32 to vector<8x128xf32>
    %175 = arith.addf %174, %173 : vector<8x128xf32>
    %176 = math.log %175 : vector<8x128xf32>
    %177 = arith.addf %168, %176 : vector<8x128xf32>
    %cst_107 = arith.constant 0.693147182 : f32
    %178 = vector.broadcast %cst_107 : f32 to vector<8x128xf32>
    %179 = arith.subf %147, %178 : vector<8x128xf32>
    %180 = arith.subf %179, %155 : vector<8x128xf32>
    %cst_108 = arith.constant 0.693147182 : f32
    %181 = vector.broadcast %cst_108 : f32 to vector<8x128xf32>
    %182 = arith.subf %149, %181 : vector<8x128xf32>
    %183 = arith.subf %182, %161 : vector<8x128xf32>
    %cst_109 = arith.constant 0.000000e+00 : f32
    %184 = vector.broadcast %cst_109 : f32 to vector<8x128xf32>
    %185 = arith.subf %184, %155 : vector<8x128xf32>
    %186 = math.exp %185 : vector<8x128xf32>
    %cst_110 = arith.constant 0.000000e+00 : f32
    %187 = vector.broadcast %cst_110 : f32 to vector<8x128xf32>
    %188 = arith.subf %187, %161 : vector<8x128xf32>
    %189 = math.exp %188 : vector<8x128xf32>
    %190 = math.absf %162 : vector<8x128xf32>
    %191 = math.absf %163 : vector<8x128xf32>
    %192 = arith.mulf %190, %186 : vector<8x128xf32>
    %193 = arith.subf %180, %192 : vector<8x128xf32>
    %194 = arith.mulf %190, %189 : vector<8x128xf32>
    %195 = arith.subf %183, %194 : vector<8x128xf32>
    %196 = arith.maximumf %193, %195 : vector<8x128xf32>
    %197 = arith.subf %193, %195 : vector<8x128xf32>
    %198 = math.absf %197 : vector<8x128xf32>
    %cst_111 = arith.constant 0.000000e+00 : f32
    %199 = vector.broadcast %cst_111 : f32 to vector<8x128xf32>
    %200 = arith.subf %199, %198 : vector<8x128xf32>
    %201 = math.exp %200 : vector<8x128xf32>
    %cst_112 = arith.constant 1.000000e+00 : f32
    %202 = vector.broadcast %cst_112 : f32 to vector<8x128xf32>
    %203 = arith.addf %202, %201 : vector<8x128xf32>
    %204 = math.log %203 : vector<8x128xf32>
    %205 = arith.addf %196, %204 : vector<8x128xf32>
    %206 = arith.subf %177, %205 : vector<8x128xf32>
    %207 = arith.mulf %191, %186 : vector<8x128xf32>
    %208 = arith.subf %180, %207 : vector<8x128xf32>
    %209 = arith.mulf %191, %189 : vector<8x128xf32>
    %210 = arith.subf %183, %209 : vector<8x128xf32>
    %211 = arith.maximumf %208, %210 : vector<8x128xf32>
    %212 = arith.subf %208, %210 : vector<8x128xf32>
    %213 = math.absf %212 : vector<8x128xf32>
    %cst_113 = arith.constant 0.000000e+00 : f32
    %214 = vector.broadcast %cst_113 : f32 to vector<8x128xf32>
    %215 = arith.subf %214, %213 : vector<8x128xf32>
    %216 = math.exp %215 : vector<8x128xf32>
    %cst_114 = arith.constant 1.000000e+00 : f32
    %217 = vector.broadcast %cst_114 : f32 to vector<8x128xf32>
    %218 = arith.addf %217, %216 : vector<8x128xf32>
    %219 = math.log %218 : vector<8x128xf32>
    %220 = arith.addf %211, %219 : vector<8x128xf32>
    %221 = arith.subf %177, %220 : vector<8x128xf32>
    %222 = tpu.weird %206 : vector<8x128xf32> -> vector<8x128xi1>
    %cst_115 = arith.constant dense<true> : vector<8x128xi1>
    %223 = arith.xori %222, %cst_115 : vector<8x128xi1>
    %224 = arith.andi %14, %223 : vector<8x128xi1>
    %225 = tpu.weird %221 : vector<8x128xf32> -> vector<8x128xi1>
    %cst_116 = arith.constant dense<true> : vector<8x128xi1>
    %226 = arith.xori %225, %cst_116 : vector<8x128xi1>
    %227 = arith.andi %14, %226 : vector<8x128xi1>
    %cst_117 = arith.constant 0.000000e+00 : f32
    %228 = vector.broadcast %cst_117 : f32 to vector<8x128xf32>
    %229 = arith.select %14, %167, %228 : vector<8x128xi1>, vector<8x128xf32>
    %cst_118 = arith.constant dense<0.000000e+00> : vector<128xf32>
    %230 = vector.multi_reduction <add>, %229, %cst_118 [0] : vector<8x128xf32> to vector<128xf32>
    %231 = vector.shape_cast %230 : vector<128xf32> to vector<1x128xf32>
    %c0_119 = arith.constant 0 : index
    %c0_120 = arith.constant 0 : index
    %c5 = arith.constant 5 : index
    %c0_121 = arith.constant 0 : index
    %232 = vector.load %arg10[%c0_119, %c0_120, %c5, %c0_121] : memref<1x1x11x128xf32, #tpu.memory_space<vmem>>, vector<1x1x1x128xf32>
    %233 = vector.shape_cast %232 : vector<1x1x1x128xf32> to vector<1x128xf32>
    %234 = vector.shape_cast %231 : vector<1x128xf32> to vector<1x1x1x128xf32>
    tpu.vector_store %arg10[%c0_119, %c0_120, %c5, %c0_121], %234 {strides = array<i32>} : memref<1x1x11x128xf32, #tpu.memory_space<vmem>>, vector<1x1x1x128xf32>,
    %cst_122 = arith.constant 0.000000e+00 : f32
    %235 = vector.broadcast %cst_122 : f32 to vector<8x128xf32>
    %236 = arith.select %224, %206, %235 : vector<8x128xi1>, vector<8x128xf32>
    %cst_123 = arith.constant 0.000000e+00 : f32
    %237 = vector.broadcast %cst_123 : f32 to vector<8x128xf32>
    %238 = arith.select %227, %221, %237 : vector<8x128xi1>, vector<8x128xf32>
    %239 = arith.addf %236, %238 : vector<8x128xf32>
    %cst_124 = arith.constant dense<0.000000e+00> : vector<128xf32>
    %240 = vector.multi_reduction <add>, %239, %cst_124 [0] : vector<8x128xf32> to vector<128xf32>
    %241 = vector.shape_cast %240 : vector<128xf32> to vector<1x128xf32>
    %c0_125 = arith.constant 0 : index
    %c0_126 = arith.constant 0 : index
    %c6 = arith.constant 6 : index
    %c0_127 = arith.constant 0 : index
    %242 = vector.load %arg10[%c0_125, %c0_126, %c6, %c0_127] : memref<1x1x11x128xf32, #tpu.memory_space<vmem>>, vector<1x1x1x128xf32>
    %243 = vector.shape_cast %242 : vector<1x1x1x128xf32> to vector<1x128xf32>
    %244 = vector.shape_cast %241 : vector<1x128xf32> to vector<1x1x1x128xf32>
    tpu.vector_store %arg10[%c0_125, %c0_126, %c6, %c0_127], %244 {strides = array<i32>} : memref<1x1x11x128xf32, #tpu.memory_space<vmem>>, vector<1x1x1x128xf32>,
    %245 = arith.extui %224 : vector<8x128xi1> to vector<8x128xi32>
    %246 = arith.sitofp %245 : vector<8x128xi32> to vector<8x128xf32>
    %247 = arith.extui %227 : vector<8x128xi1> to vector<8x128xi32>
    %248 = arith.sitofp %247 : vector<8x128xi32> to vector<8x128xf32>
    %249 = arith.addf %246, %248 : vector<8x128xf32>
    %cst_128 = arith.constant dense<0.000000e+00> : vector<128xf32>
    %250 = vector.multi_reduction <add>, %249, %cst_128 [0] : vector<8x128xf32> to vector<128xf32>
    %251 = vector.shape_cast %250 : vector<128xf32> to vector<1x128xf32>
    %c0_129 = arith.constant 0 : index
    %c0_130 = arith.constant 0 : index
    %c7 = arith.constant 7 : index
    %c0_131 = arith.constant 0 : index
    %252 = vector.load %arg10[%c0_129, %c0_130, %c7, %c0_131] : memref<1x1x11x128xf32, #tpu.memory_space<vmem>>, vector<1x1x1x128xf32>
    %253 = vector.shape_cast %252 : vector<1x1x1x128xf32> to vector<1x128xf32>
    %254 = vector.shape_cast %251 : vector<1x128xf32> to vector<1x1x1x128xf32>
    tpu.vector_store %arg10[%c0_129, %c0_130, %c7, %c0_131], %254 {strides = array<i32>} : memref<1x1x11x128xf32, #tpu.memory_space<vmem>>, vector<1x1x1x128xf32>,
    %c0_132 = arith.constant 0 : index
    %c0_133 = arith.constant 0 : index
    %c0_134 = arith.constant 0 : index
    %c0_135 = arith.constant 0 : index
    %255 = vector.load %arg6[%c0_132, %c0_133, %c0_134, %c0_135] : memref<1x2x8x128xf32, #tpu.memory_space<vmem>>, vector<1x1x8x128xf32>
    %256 = vector.shape_cast %255 : vector<1x1x8x128xf32> to vector<8x128xf32>
    %c0_136 = arith.constant 0 : index
    %c1_137 = arith.constant 1 : index
    %c0_138 = arith.constant 0 : index
    %c0_139 = arith.constant 0 : index
    %257 = vector.load %arg6[%c0_136, %c1_137, %c0_138, %c0_139] : memref<1x2x8x128xf32, #tpu.memory_space<vmem>>, vector<1x1x8x128xf32>
    %258 = vector.shape_cast %257 : vector<1x1x8x128xf32> to vector<8x128xf32>
    %c0_140 = arith.constant 0 : index
    %c0_141 = arith.constant 0 : index
    %c0_142 = arith.constant 0 : index
    %c0_143 = arith.constant 0 : index
    %259 = vector.load %arg9[%c0_140, %c0_141, %c0_142, %c0_143] : memref<1x4x8x128xf32, #tpu.memory_space<vmem>>, vector<1x1x8x128xf32>
    %260 = vector.shape_cast %259 : vector<1x1x8x128xf32> to vector<8x128xf32>
    %c0_144 = arith.constant 0 : index
    %c1_145 = arith.constant 1 : index
    %c0_146 = arith.constant 0 : index
    %c0_147 = arith.constant 0 : index
    %261 = vector.load %arg9[%c0_144, %c1_145, %c0_146, %c0_147] : memref<1x4x8x128xf32, #tpu.memory_space<vmem>>, vector<1x1x8x128xf32>
    %262 = vector.shape_cast %261 : vector<1x1x8x128xf32> to vector<8x128xf32>
    %c0_148 = arith.constant 0 : index
    %c2_149 = arith.constant 2 : index
    %c0_150 = arith.constant 0 : index
    %c0_151 = arith.constant 0 : index
    %263 = vector.load %arg9[%c0_148, %c2_149, %c0_150, %c0_151] : memref<1x4x8x128xf32, #tpu.memory_space<vmem>>, vector<1x1x8x128xf32>
    %264 = vector.shape_cast %263 : vector<1x1x8x128xf32> to vector<8x128xf32>
    %cst_152 = arith.constant 0.000000e+00 : f32
    %cst_153 = arith.constant 1.000000e+01 : f32
    %265 = vector.broadcast %cst_152 : f32 to vector<8x128xf32>
    %266 = arith.maximumf %265, %264 : vector<8x128xf32>
    %267 = vector.broadcast %cst_153 : f32 to vector<8x128xf32>
    %268 = arith.minimumf %267, %266 : vector<8x128xf32>
    %c0_154 = arith.constant 0 : index
    %c3_155 = arith.constant 3 : index
    %c0_156 = arith.constant 0 : index
    %c0_157 = arith.constant 0 : index
    %269 = vector.load %arg9[%c0_154, %c3_155, %c0_156, %c0_157] : memref<1x4x8x128xf32, #tpu.memory_space<vmem>>, vector<1x1x8x128xf32>
    %270 = vector.shape_cast %269 : vector<1x1x8x128xf32> to vector<8x128xf32>
    %cst_158 = arith.constant 0.000000e+00 : f32
    %cst_159 = arith.constant 0.000000e+00 : f32
    %271 = vector.broadcast %cst_158 : f32 to vector<8x128xf32>
    %272 = arith.maximumf %271, %270 : vector<8x128xf32>
    %273 = vector.broadcast %cst_159 : f32 to vector<8x128xf32>
    %274 = arith.minimumf %273, %272 : vector<8x128xf32>
    %275 = arith.subf %1, %256 : vector<8x128xf32>
    %276 = arith.subf %3, %258 : vector<8x128xf32>
    %277 = arith.mulf %275, %275 : vector<8x128xf32>
    %278 = arith.mulf %276, %276 : vector<8x128xf32>
    %279 = arith.addf %277, %278 : vector<8x128xf32>
    %280 = math.sqrt %279 : vector<8x128xf32>
    %281 = arith.maximumf %260, %262 : vector<8x128xf32>
    %282 = arith.subf %260, %262 : vector<8x128xf32>
    %283 = math.absf %282 : vector<8x128xf32>
    %cst_160 = arith.constant 0.000000e+00 : f32
    %284 = vector.broadcast %cst_160 : f32 to vector<8x128xf32>
    %285 = arith.subf %284, %283 : vector<8x128xf32>
    %286 = math.exp %285 : vector<8x128xf32>
    %cst_161 = arith.constant 1.000000e+00 : f32
    %287 = vector.broadcast %cst_161 : f32 to vector<8x128xf32>
    %288 = arith.addf %287, %286 : vector<8x128xf32>
    %289 = math.log %288 : vector<8x128xf32>
    %290 = arith.addf %281, %289 : vector<8x128xf32>
    %cst_162 = arith.constant 0.693147182 : f32
    %291 = vector.broadcast %cst_162 : f32 to vector<8x128xf32>
    %292 = arith.subf %260, %291 : vector<8x128xf32>
    %293 = arith.subf %292, %268 : vector<8x128xf32>
    %cst_163 = arith.constant 0.693147182 : f32
    %294 = vector.broadcast %cst_163 : f32 to vector<8x128xf32>
    %295 = arith.subf %262, %294 : vector<8x128xf32>
    %296 = arith.subf %295, %274 : vector<8x128xf32>
    %cst_164 = arith.constant 0.000000e+00 : f32
    %297 = vector.broadcast %cst_164 : f32 to vector<8x128xf32>
    %298 = arith.subf %297, %268 : vector<8x128xf32>
    %299 = math.exp %298 : vector<8x128xf32>
    %cst_165 = arith.constant 0.000000e+00 : f32
    %300 = vector.broadcast %cst_165 : f32 to vector<8x128xf32>
    %301 = arith.subf %300, %274 : vector<8x128xf32>
    %302 = math.exp %301 : vector<8x128xf32>
    %303 = math.absf %275 : vector<8x128xf32>
    %304 = math.absf %276 : vector<8x128xf32>
    %305 = arith.mulf %303, %299 : vector<8x128xf32>
    %306 = arith.subf %293, %305 : vector<8x128xf32>
    %307 = arith.mulf %303, %302 : vector<8x128xf32>
    %308 = arith.subf %296, %307 : vector<8x128xf32>
    %309 = arith.maximumf %306, %308 : vector<8x128xf32>
    %310 = arith.subf %306, %308 : vector<8x128xf32>
    %311 = math.absf %310 : vector<8x128xf32>
    %cst_166 = arith.constant 0.000000e+00 : f32
    %312 = vector.broadcast %cst_166 : f32 to vector<8x128xf32>
    %313 = arith.subf %312, %311 : vector<8x128xf32>
    %314 = math.exp %313 : vector<8x128xf32>
    %cst_167 = arith.constant 1.000000e+00 : f32
    %315 = vector.broadcast %cst_167 : f32 to vector<8x128xf32>
    %316 = arith.addf %315, %314 : vector<8x128xf32>
    %317 = math.log %316 : vector<8x128xf32>
    %318 = arith.addf %309, %317 : vector<8x128xf32>
    %319 = arith.subf %290, %318 : vector<8x128xf32>
    %320 = arith.mulf %304, %299 : vector<8x128xf32>
    %321 = arith.subf %293, %320 : vector<8x128xf32>
    %322 = arith.mulf %304, %302 : vector<8x128xf32>
    %323 = arith.subf %296, %322 : vector<8x128xf32>
    %324 = arith.maximumf %321, %323 : vector<8x128xf32>
    %325 = arith.subf %321, %323 : vector<8x128xf32>
    %326 = math.absf %325 : vector<8x128xf32>
    %cst_168 = arith.constant 0.000000e+00 : f32
    %327 = vector.broadcast %cst_168 : f32 to vector<8x128xf32>
    %328 = arith.subf %327, %326 : vector<8x128xf32>
    %329 = math.exp %328 : vector<8x128xf32>
    %cst_169 = arith.constant 1.000000e+00 : f32
    %330 = vector.broadcast %cst_169 : f32 to vector<8x128xf32>
    %331 = arith.addf %330, %329 : vector<8x128xf32>
    %332 = math.log %331 : vector<8x128xf32>
    %333 = arith.addf %324, %332 : vector<8x128xf32>
    %334 = arith.subf %290, %333 : vector<8x128xf32>
    %335 = tpu.weird %319 : vector<8x128xf32> -> vector<8x128xi1>
    %cst_170 = arith.constant dense<true> : vector<8x128xi1>
    %336 = arith.xori %335, %cst_170 : vector<8x128xi1>
    %337 = arith.andi %14, %336 : vector<8x128xi1>
    %338 = tpu.weird %334 : vector<8x128xf32> -> vector<8x128xi1>
    %cst_171 = arith.constant dense<true> : vector<8x128xi1>
    %339 = arith.xori %338, %cst_171 : vector<8x128xi1>
    %340 = arith.andi %14, %339 : vector<8x128xi1>
    %cst_172 = arith.constant 0.000000e+00 : f32
    %341 = vector.broadcast %cst_172 : f32 to vector<8x128xf32>
    %342 = arith.select %14, %280, %341 : vector<8x128xi1>, vector<8x128xf32>
    %cst_173 = arith.constant dense<0.000000e+00> : vector<128xf32>
    %343 = vector.multi_reduction <add>, %342, %cst_173 [0] : vector<8x128xf32> to vector<128xf32>
    %344 = vector.shape_cast %343 : vector<128xf32> to vector<1x128xf32>
    %c0_174 = arith.constant 0 : index
    %c0_175 = arith.constant 0 : index
    %c8 = arith.constant 8 : index
    %c0_176 = arith.constant 0 : index
    %345 = vector.load %arg10[%c0_174, %c0_175, %c8, %c0_176] : memref<1x1x11x128xf32, #tpu.memory_space<vmem>>, vector<1x1x1x128xf32>
    %346 = vector.shape_cast %345 : vector<1x1x1x128xf32> to vector<1x128xf32>
    %347 = vector.shape_cast %344 : vector<1x128xf32> to vector<1x1x1x128xf32>
    tpu.vector_store %arg10[%c0_174, %c0_175, %c8, %c0_176], %347 {strides = array<i32>} : memref<1x1x11x128xf32, #tpu.memory_space<vmem>>, vector<1x1x1x128xf32>,
    %cst_177 = arith.constant 0.000000e+00 : f32
    %348 = vector.broadcast %cst_177 : f32 to vector<8x128xf32>
    %349 = arith.select %337, %319, %348 : vector<8x128xi1>, vector<8x128xf32>
    %cst_178 = arith.constant 0.000000e+00 : f32
    %350 = vector.broadcast %cst_178 : f32 to vector<8x128xf32>
    %351 = arith.select %340, %334, %350 : vector<8x128xi1>, vector<8x128xf32>
    %352 = arith.addf %349, %351 : vector<8x128xf32>
    %cst_179 = arith.constant dense<0.000000e+00> : vector<128xf32>
    %353 = vector.multi_reduction <add>, %352, %cst_179 [0] : vector<8x128xf32> to vector<128xf32>
    %354 = vector.shape_cast %353 : vector<128xf32> to vector<1x128xf32>
    %c0_180 = arith.constant 0 : index
    %c0_181 = arith.constant 0 : index
    %c9 = arith.constant 9 : index
    %c0_182 = arith.constant 0 : index
    %355 = vector.load %arg10[%c0_180, %c0_181, %c9, %c0_182] : memref<1x1x11x128xf32, #tpu.memory_space<vmem>>, vector<1x1x1x128xf32>
    %356 = vector.shape_cast %355 : vector<1x1x1x128xf32> to vector<1x128xf32>
    %357 = vector.shape_cast %354 : vector<1x128xf32> to vector<1x1x1x128xf32>
    tpu.vector_store %arg10[%c0_180, %c0_181, %c9, %c0_182], %357 {strides = array<i32>} : memref<1x1x11x128xf32, #tpu.memory_space<vmem>>, vector<1x1x1x128xf32>,
    %358 = arith.extui %337 : vector<8x128xi1> to vector<8x128xi32>
    %359 = arith.sitofp %358 : vector<8x128xi32> to vector<8x128xf32>
    %360 = arith.extui %340 : vector<8x128xi1> to vector<8x128xi32>
    %361 = arith.sitofp %360 : vector<8x128xi32> to vector<8x128xf32>
    %362 = arith.addf %359, %361 : vector<8x128xf32>
    %cst_183 = arith.constant dense<0.000000e+00> : vector<128xf32>
    %363 = vector.multi_reduction <add>, %362, %cst_183 [0] : vector<8x128xf32> to vector<128xf32>
    %364 = vector.shape_cast %363 : vector<128xf32> to vector<1x128xf32>
    %c0_184 = arith.constant 0 : index
    %c0_185 = arith.constant 0 : index
    %c10 = arith.constant 10 : index
    %c0_186 = arith.constant 0 : index
    %365 = vector.load %arg10[%c0_184, %c0_185, %c10, %c0_186] : memref<1x1x11x128xf32, #tpu.memory_space<vmem>>, vector<1x1x1x128xf32>
    %366 = vector.shape_cast %365 : vector<1x1x1x128xf32> to vector<1x128xf32>
    %367 = vector.shape_cast %364 : vector<1x128xf32> to vector<1x1x1x128xf32>
    tpu.vector_store %arg10[%c0_184, %c0_185, %c10, %c0_186], %367 {strides = array<i32>} : memref<1x1x11x128xf32, #tpu.memory_space<vmem>>, vector<1x1x1x128xf32>,
    return
  }
  func.func @transform_0(%arg0: i32, %arg1: i32) -> (i32, i32, i32, i32) {
    %c0_i32 = arith.constant 0 : i32
    %c0_i32_0 = arith.constant 0 : i32
    %c0_i32_1 = arith.constant 0 : i32
    return %arg0, %c0_i32, %arg1, %c0_i32_0 : i32, i32, i32, i32
  }
  func.func @transform_1(%arg0: i32, %arg1: i32) -> (i32, i32, i32, i32) {
    %c0_i32 = arith.constant 0 : i32
    %c0_i32_0 = arith.constant 0 : i32
    %c0_i32_1 = arith.constant 0 : i32
    return %arg0, %c0_i32, %arg1, %c0_i32_0 : i32, i32, i32, i32
  }
  func.func @transform_2(%arg0: i32, %arg1: i32) -> (i32, i32, i32, i32) {
    %c0_i32 = arith.constant 0 : i32
    %c0_i32_0 = arith.constant 0 : i32
    %c0_i32_1 = arith.constant 0 : i32
    return %arg0, %c0_i32, %arg1, %c0_i32_0 : i32, i32, i32, i32
  }
  func.func @transform_3(%arg0: i32, %arg1: i32) -> (i32, i32, i32, i32) {
    %c0_i32 = arith.constant 0 : i32
    %c0_i32_0 = arith.constant 0 : i32
    %c0_i32_1 = arith.constant 0 : i32
    return %arg0, %c0_i32, %arg1, %c0_i32_0 : i32, i32, i32, i32
  }
  func.func @transform_4(%arg0: i32, %arg1: i32) -> (i32, i32, i32, i32) {
    %c0_i32 = arith.constant 0 : i32
    %c0_i32_0 = arith.constant 0 : i32
    %c0_i32_1 = arith.constant 0 : i32
    return %arg0, %c0_i32, %arg1, %c0_i32_0 : i32, i32, i32, i32
  }
  func.func @transform_5(%arg0: i32, %arg1: i32) -> (i32, i32, i32, i32) {
    %c0_i32 = arith.constant 0 : i32
    %c0_i32_0 = arith.constant 0 : i32
    %c0_i32_1 = arith.constant 0 : i32
    return %arg0, %c0_i32, %arg1, %c0_i32_0 : i32, i32, i32, i32
  }
  func.func @transform_6(%arg0: i32, %arg1: i32) -> (i32, i32, i32, i32) {
    %c0_i32 = arith.constant 0 : i32
    %c0_i32_0 = arith.constant 0 : i32
    %c0_i32_1 = arith.constant 0 : i32
    return %arg0, %c0_i32, %arg1, %c0_i32_0 : i32, i32, i32, i32
  }
  func.func @transform_7(%arg0: i32, %arg1: i32) -> (i32, i32, i32, i32) {
    %c0_i32 = arith.constant 0 : i32
    %c0_i32_0 = arith.constant 0 : i32
    %c0_i32_1 = arith.constant 0 : i32
    return %arg0, %c0_i32, %arg1, %c0_i32_0 : i32, i32, i32, i32
  }
  func.func @transform_8(%arg0: i32, %arg1: i32) -> (i32, i32, i32, i32) {
    %c0_i32 = arith.constant 0 : i32
    %c0_i32_0 = arith.constant 0 : i32
    %c0_i32_1 = arith.constant 0 : i32
    return %arg0, %arg1, %c0_i32, %c0_i32_0 : i32, i32, i32, i32
  }
}

</mosaic_0001>

<bundles_post_ra>
// kernel: tpu_custom_call.1
= control target key start
LH: loop header
LB: loop body
LE: loop exit
PB: predicated region body
PF: predicated region fallthrough
CT: control target
= control target key end

     0   :  { %s2563_s0 = inlined_call_operand.hbm [shape: f32[2,2,8,128], index: 0, kind: input, shape index: {}]   ;;  %s2564_s1 = inlined_call_operand.hbm [shape: f32[2,1,8,128], index: 1, kind: input, shape index: {}]   ;;  %s2565_s2 = inlined_call_operand.hbm [shape: f32[2,2,8,128], index: 2, kind: input, shape index: {}]   ;;  %s2566_s3 = inlined_call_operand.hbm [shape: f32[2,2,8,128], index: 3, kind: input, shape index: {}]   ;;  %s2567_s4 = inlined_call_operand.hbm [shape: f32[2,2,8,128], index: 4, kind: input, shape index: {}]   ;;  %s2568_s5 = inlined_call_operand.hbm [shape: f32[2,4,8,128], index: 5, kind: input, shape index: {}]   ;;  %s2569_s6 = inlined_call_operand.hbm [shape: f32[2,4,8,128], index: 6, kind: input, shape index: {}]   ;;  %s2570_s7 = inlined_call_operand.hbm [shape: f32[2,4,8,128], index: 7, kind: input, shape index: {}]   ;;  %s2571_s8 = inlined_call_operand.vmem [shape: f32[2,1,11,128], index: 8, kind: output, shape index: {}]  }
   0x1   :  { %2580 = sst [smem:[#allocation24_spill]] %s2564_s1 }
   0x2   :  { %2581 = sst [smem:[#allocation25_spill]] %s2566_s3 }
   0x3   :  { %2582 = sst [smem:[#allocation26_spill]] %s2571_s8 }
   0x4   :  { %13 = vsyncpa [#allocation3], 0 }
   0x5   :  { %15 = vsyncpa [#allocation3 + $0x1], 0 }
   0x6   :  { %16 = vsyncpa [#allocation5], 0 }
   0x7   :  { %18 = vsyncpa [#allocation5 + $0x1], 0 }
   0x8   :  { %19 = vsyncpa [#allocation8], 0 }
   0x9   :  { %21 = vsyncpa [#allocation8 + $0x1], 0 }
   0xa   :  { %22 = vsyncpa [#allocation11], 0 }
   0xb   :  { %24 = vsyncpa [#allocation11 + $0x1], 0 }
   0xc   :  { %25 = vsyncpa [#allocation14], 0 }
   0xd   :  { %27 = vsyncpa [#allocation14 + $0x1], 0  ;;  %s1870_s27 = smov 0   ;;  %s1872_s28 = smov 0  }
   0xe   :  { %s1874_s29 = smov 0   ;;  %s1876_s30 = smov 0  }
   0xf   :  { %s1878_s9 = smov 0   ;;  %s1880_s10 = smov 0  }
  0x10 LB: > { %2583 = sst [smem:[#allocation20_spill]] %s1799_s29  ;;  %s2572_s11 = sadd.s32 4294967295, %s1811_s10   ;;  %s1811_s10 = sphi %s1880_s10, %s33_s10   ;;  %s1807_s9 = sphi %s1878_s9, %s2609_s9   ;;  %s1803_s30 = sphi %s1876_s30, %s2608_s30   ;;  %s1799_s29 = sphi %s1874_s29, %s2604_s29   ;;  %s1795_s28 = sphi %s1872_s28, %s2607_s28   ;;  %s1791_s27 = sphi %s1870_s27, %s2606_s27  }
  0x11   : > { %2584 = sst [smem:[#allocation21_spill]] %s1803_s30  ;;  %s45_s12 = sadd.s32 1, %s1807_s9 }
  0x12   : > { %p47_p0 = scmp.ge.s32.totalorder %s45_s12, 2  ;;  %s54_s13 = sadd.s32 1, %s1799_s29 }
  0x13   : > { %p61_p1 = scmp.ne.s32.totalorder %s1799_s29, %s1795_s28  ;;  %p62_p2 = scmp.eq.s32.totalorder %s1811_s10, 0 }
  0x14   : > { %s2611_s12 = smov (%p47_p0, %s45_s12), 0  ;;  %p67_p4 = scmp.ne.s32.totalorder %s1795_s28, %s1791_s27 }
  0x15   : > { %2585 = sst [smem:[#allocation22_spill]] %s2611_s12  ;;  %p63_p3 = por %p62_p2, %p61_p1 }
  0x16   : > { %s49_s14 = ssub.s32 %s1807_s9, %s2611_s12  ;;  %p68_p5 = scmp.eq.s32.totalorder %s2572_s11, 0 }
  0x17   : > { %p52_p6 = scmp.eq.s32.totalorder %s49_s14, 0  ;;  %p1396_p8 = scmp.lt.s32.totalorder %s1811_s10, 2 }
  0x18   : > { %p1911_p7 = por %p68_p5, %p67_p4  ;;  %s1920_s17 = sand.u32 1, %s1799_s29  }
  0x19   : > { %s1917_s16 = scalar_select %p52_p6, %s1799_s29, %s54_s13  }
  0x1a   : > { %s2586_s15 = scalar_select %p1911_p7, 1, 0 }
  0x1b   : > { %2587 = sst [smem:[#allocation23_spill]] %s1917_s16  ;;  %p1922_p9 = pnand %p1396_p8, %p63_p3 }
  0x1c   : > { %s1927_s19 = sand.u32 1, %s1811_s10   ;;  %s1285_s20 = sshll.u32 %s1920_s17, 3 }
  0x1d   : > { %s1286_s21 = sshll.u32 %s1807_s9, 7  ;;  %s2589_s1 = sld [smem:[#allocation24_spill]] }
  0x1e   : > { %s341_s25 = scalar_lea.vmem [#allocation4], %s1285_s20  ;;  %s2574_s27 = scalar_lea.sflag [#allocation5], %s1927_s19 }
  0x1f   : > { %s349_s26 = sshll.u32 %s341_s25, 4  ;;  %p1943_p11 = pneg %p1922_p9  ;;  %s1936_s26 = int_to_ptr.vmem [resolvable:$true] %s349_s26 }
  0x23   : > { %s1934_s24 = scalar_lea.hbm %s2589_s1, %s1286_s21  ;;  %s1510_s23 = scalar_lea.hbm %s2589_s1, 256 }
  0x24   : > { %s1505_s13 = scalar_lea.hbm %s1934_s24, 128  ;;  %p1511_p0 = scmp.lt.u32.totalorder %s1934_s24, %s2589_s1 }
  0x25   : > { %p1506_p10 = scmp.ne.s32.totalorder %s1934_s24, %s1505_s13  ;;  %p1512_p1 = scmp.lt.u32.totalorder %s1510_s23, %s1505_s13 }
  0x26   : > { %p1514_p3 = scmp.lt.u32.totalorder %s1505_s13, %s1934_s24 }
  0x27   : > { %p1508_p12 = pnand %p1943_p11, %p1506_p10  ;;  %p1513_p2 = por %p1512_p1, %p1511_p0 }
  0x29   : > { %p1509_p13 = pneg %p1508_p12  ;;  %p1515_p4 = por %p1514_p3, %p1513_p2 }
  0x2b   : > { %p1516_p5 = pnand %p1515_p4, %p1509_p13 }
  0x2d   : > { %1519 = shalt.err (!%p1516_p5)
}
  0x2e   : > { %s1520_s11 = scalar_lea.vmem %s1936_s26, 128  ;;  %s1813_s21 = smov [#allocation4]  }
  0x2f   : > { %p1521_p6 = scmp.ne.s32.totalorder %s1936_s26, %s1520_s11  ;;  %s1525_s22 = sshll.u32 %s1813_s21, 4  ;;  %s1526_s22 = int_to_ptr.vmem [resolvable:$false] %s1525_s22 }
  0x30   : > { %s1527_s20 = scalar_lea.vmem %s1526_s22, 256  ;;  %p1528_p12 = scmp.lt.s32.totalorder %s1936_s26, %s1526_s22 }
  0x31   : > { %p1523_p8 = pnand %p1521_p6, %p1943_p11  ;;  %p1529_p7 = scmp.lt.s32.totalorder %s1527_s20, %s1520_s11 }
  0x33   : > { %p1524_p10 = pneg %p1523_p8  ;;  %p1530_p0 = por %p1529_p7, %p1528_p12 }
  0x35   : > { %p1531_p1 = pnand %p1530_p0, %p1524_p10 }
  0x37   : > { %1534 = shalt.err (!%p1531_p1)
}
  0x38   : > { %1377 = dma.hbm_to_vmem [thread:$0]  (!%p1922_p9), %s1934_s24, 128, %s1936_s26, %s2574_s27  }
  0x39   : > { %p1305_p13 = scmp.ge.s32.totalorder %s1811_s10, 1  ;;  %p486_p2 = scmp.lt.s32.totalorder %s1811_s10, 3 }
  0x3a   : > { %s1971_s11 = sshll.u32 %s1920_s17, 4  ;;  %s1974_s13 = sshll.u32 %s1807_s9, 8 }
  0x3b   : > { %p1976_p7 = pnand %p1305_p13, %p486_p2  ;;  %s2592_s3 = sld [smem:[#allocation25_spill]] }
  0x3c   : > { %s382_s24 = scalar_lea.vmem [#allocation7], %s1971_s11  ;;  %s1988_s20 = sshll.u32 %s1920_s17, 5 }
  0x3d   : > { %s2591_s23 = scalar_select %p1976_p7, 1, 0 }
  0x3e   : > { %s390_s26 = sshll.u32 %s382_s24, 4  ;;  %s2578_s27 = scalar_lea.sflag [#allocation8], %s1927_s19  ;;  %s1990_s26 = int_to_ptr.vmem [resolvable:$true] %s390_s26 }
  0x41   : > { %s1984_s22 = scalar_lea.hbm %s2592_s3, %s1974_s13  ;;  %s1540_s21 = scalar_lea.hbm %s2592_s3, 512 }
  0x42   : > { %s1535_s1 = scalar_lea.hbm %s1984_s22, 256  ;;  %p1541_p6 = scmp.lt.u32.totalorder %s1984_s22, %s2592_s3 }
  0x43   : > { %p1536_p3 = scmp.ne.s32.totalorder %s1984_s22, %s1535_s1  ;;  %p1542_p8 = scmp.lt.u32.totalorder %s1540_s21, %s1535_s1 }
  0x44   : > { %p1544_p12 = scmp.lt.u32.totalorder %s1535_s1, %s1984_s22 }
  0x45   : > { %p1538_p4 = pnand %p1536_p3, %p1943_p11  ;;  %p1543_p10 = por %p1542_p8, %p1541_p6 }
  0x47   : > { %p1539_p5 = pneg %p1538_p4  ;;  %p1545_p0 = por %p1544_p12, %p1543_p10 }
  0x49   : > { %p1546_p1 = pnand %p1545_p0, %p1539_p5 }
  0x4b   : > { %1549 = shalt.err (!%p1546_p1)
}
  0x4c   : > { %s1550_s24 = scalar_lea.vmem %s1990_s26, 256  ;;  %s1814_s12 = smov [#allocation7]  }
  0x4d   : > { %p1551_p13 = scmp.ne.s32.totalorder %s1990_s26, %s1550_s24  ;;  %s1555_s25 = sshll.u32 %s1814_s12, 4  ;;  %s1556_s25 = int_to_ptr.vmem [resolvable:$false] %s1555_s25 }
  0x4e   : > { %s1557_s29 = scalar_lea.vmem %s1556_s25, 512  ;;  %p1558_p4 = scmp.lt.s32.totalorder %s1990_s26, %s1556_s25 }
  0x4f   : > { %p1553_p2 = pnand %p1551_p13, %p1943_p11  ;;  %p1559_p7 = scmp.lt.s32.totalorder %s1557_s29, %s1550_s24 }
  0x51   : > { %p1554_p3 = pneg %p1553_p2  ;;  %p1560_p6 = por %p1559_p7, %p1558_p4 }
  0x53   : > { %p1561_p8 = pnand %p1560_p6, %p1554_p3 }
  0x55   : > { %1564 = shalt.err (!%p1561_p8)
}
  0x56   : > { %s1815_s1 = smov 128   ;;  %s1816_s16 = smov 8  }
  0x57   : > { %1383 = dma.hbm_to_vmem [thread:$0]  (!%p1922_p9), %s1984_s22, 256, %s1990_s26, %s2578_s27, %s1815_s1, %s1815_s1, %s1816_s16  }
  0x58   : > { %s2020_s21 = sshll.u32 %s1807_s9, 9  ;;  %s426_s24 = scalar_lea.vmem [#allocation10], %s1988_s20 }
  0x59   : > { %s434_s12 = sshll.u32 %s426_s24, 4  ;;  %s2027_s3 = scalar_lea.hbm %s2568_s5, %s2020_s21  ;;  %s2029_s12 = int_to_ptr.vmem [resolvable:$true] %s434_s12 }
  0x5a   : > { %s2579_s8 = scalar_lea.sflag [#allocation11], %s1927_s19  ;;  %s1565_s30 = scalar_lea.hbm %s2027_s3, 512 }
  0x5b   : > { %p1566_p7 = scmp.ne.s32.totalorder %s2027_s3, %s1565_s30  ;;  %s1570_s24 = scalar_lea.hbm %s2568_s5, 1024 }
  0x5c   : > { %p1571_p12 = scmp.lt.u32.totalorder %s2027_s3, %s2568_s5  ;;  %p1572_p0 = scmp.lt.u32.totalorder %s1570_s24, %s1565_s30 }
  0x5d   : > { %p1568_p5 = pnand %p1566_p7, %p1943_p11  ;;  %p1574_p13 = scmp.lt.u32.totalorder %s1565_s30, %s2027_s3 }
  0x5e   : > { %p1573_p1 = por %p1572_p0, %p1571_p12 }
  0x5f   : > { %p1569_p10 = pneg %p1568_p5 }
  0x60   : > { %p1575_p2 = por %p1574_p13, %p1573_p1 }
  0x62   : > { %p1576_p3 = pnand %p1575_p2, %p1569_p10 }
  0x64   : > { %1579 = shalt.err (!%p1576_p3)
}
  0x65   : > { %s1580_s29 = scalar_lea.vmem %s2029_s12, 512  ;;  %s1817_s22 = smov [#allocation10]  }
  0x66   : > { %p1581_p4 = scmp.ne.s32.totalorder %s2029_s12, %s1580_s29  ;;  %s1585_s26 = sshll.u32 %s1817_s22, 4  ;;  %s1586_s26 = int_to_ptr.vmem [resolvable:$false] %s1585_s26 }
  0x67   : > { %s1587_s27 = scalar_lea.vmem %s1586_s26, 1024  ;;  %p1588_p7 = scmp.lt.s32.totalorder %s2029_s12, %s1586_s26 }
  0x68   : > { %p1583_p6 = pnand %p1581_p4, %p1943_p11  ;;  %p1589_p5 = scmp.lt.s32.totalorder %s1587_s27, %s1580_s29 }
  0x6a   : > { %p1584_p8 = pneg %p1583_p6  ;;  %p1590_p12 = por %p1589_p5, %p1588_p7 }
  0x6c   : > { %p1591_p0 = pnand %p1590_p12, %p1584_p8 }
  0x6e   : > { %1594 = shalt.err (!%p1591_p0)
}
  0x6f   : > { %1389 = dma.hbm_to_vmem [thread:$0]  (!%p1922_p9), %s2027_s3, 512, %s2029_s12, %s2579_s8, %s1815_s1, %s1815_s1, %s1816_s16  }
  0x70   : > { %s2062_s25 = scalar_lea.hbm %s2563_s0, %s1974_s13  ;;  %s319_s29 = scalar_lea.vmem [#allocation2], %s1971_s11 }
  0x71   : > { %s327_s22 = sshll.u32 %s319_s29, 4  ;;  %s316_s26 = scalar_lea.sflag [#allocation3], %s1920_s17  ;;  %s2065_s22 = int_to_ptr.vmem [resolvable:$true] %s327_s22 }
  0x72   : > { %s1595_s27 = scalar_lea.hbm %s2062_s25, 256  ;;  %s1600_s30 = scalar_lea.hbm %s2563_s0, 512 }
  0x73   : > { %p1596_p10 = scmp.ne.s32.totalorder %s2062_s25, %s1595_s27  ;;  %p1601_p2 = scmp.lt.u32.totalorder %s2062_s25, %s2563_s0 }
  0x74   : > { %p1602_p3 = scmp.lt.u32.totalorder %s1600_s30, %s1595_s27  ;;  %p1604_p6 = scmp.lt.u32.totalorder %s1595_s27, %s2062_s25 }
  0x75   : > { %p1598_p1 = pnand %p1596_p10, %p1943_p11 }
  0x76   : > { %p1603_p4 = por %p1602_p3, %p1601_p2 }
  0x77   : > { %p1599_p13 = pneg %p1598_p1 }
  0x78   : > { %p1605_p8 = por %p1604_p6, %p1603_p4 }
  0x7a   : > { %p1606_p7 = pnand %p1605_p8, %p1599_p13 }
  0x7c   : > { %1609 = shalt.err (!%p1606_p7)
}
  0x7d   : > { %s1610_s29 = scalar_lea.vmem %s2065_s22, 256  ;;  %s1818_s3 = smov [#allocation2]  }
  0x7e   : > { %p1611_p5 = scmp.ne.s32.totalorder %s2065_s22, %s1610_s29  ;;  %s1615_s12 = sshll.u32 %s1818_s3, 4  ;;  %s1616_s12 = int_to_ptr.vmem [resolvable:$false] %s1615_s12 }
  0x7f   : > { %s1617_s8 = scalar_lea.vmem %s1616_s12, 512  ;;  %p1618_p10 = scmp.lt.s32.totalorder %s2065_s22, %s1616_s12 }
  0x80   : > { %p1613_p12 = pnand %p1611_p5, %p1943_p11  ;;  %p1619_p1 = scmp.lt.s32.totalorder %s1617_s8, %s1610_s29 }
  0x82   : > { %p1614_p0 = pneg %p1613_p12  ;;  %p1620_p2 = por %p1619_p1, %p1618_p10 }
  0x84   : > { %p1621_p3 = pnand %p1620_p2, %p1614_p0 }
  0x86   : > { %1624 = shalt.err (!%p1621_p3)
}
  0x87   : > { %1374 = dma.hbm_to_vmem [thread:$0]  (!%p1922_p9), %s2062_s25, 256, %s2065_s22, %s316_s26, %s1815_s1, %s1815_s1, %s1816_s16  }
  0x88   : > { %s2098_s24 = scalar_lea.hbm %s2565_s2, %s1974_s13  ;;  %s360_s29 = scalar_lea.vmem [#allocation6], %s1971_s11 }
  0x89   : > { %s368_s3 = sshll.u32 %s360_s29, 4  ;;  %s1625_s12 = scalar_lea.hbm %s2098_s24, 256  ;;  %s2101_s3 = int_to_ptr.vmem [resolvable:$true] %s368_s3 }
  0x8a   : > { %p1626_p13 = scmp.ne.s32.totalorder %s2098_s24, %s1625_s12  ;;  %s1630_s22 = scalar_lea.hbm %s2565_s2, 512 }
  0x8b   : > { %p1631_p8 = scmp.lt.u32.totalorder %s2098_s24, %s2565_s2  ;;  %p1632_p7 = scmp.lt.u32.totalorder %s1630_s22, %s1625_s12 }
  0x8c   : > { %p1628_p4 = pnand %p1626_p13, %p1943_p11  ;;  %p1634_p12 = scmp.lt.u32.totalorder %s1625_s12, %s2098_s24 }
  0x8d   : > { %p1633_p5 = por %p1632_p7, %p1631_p8 }
  0x8e   : > { %p1629_p6 = pneg %p1628_p4 }
  0x8f   : > { %p1635_p0 = por %p1634_p12, %p1633_p5 }
  0x91   : > { %p1636_p10 = pnand %p1635_p0, %p1629_p6 }
  0x93   : > { %1639 = shalt.err (!%p1636_p10)
}
  0x94   : > { %s1640_s30 = scalar_lea.vmem %s2101_s3, 256  ;;  %s1819_s29 = smov [#allocation6]  }
  0x95   : > { %p1641_p1 = scmp.ne.s32.totalorder %s2101_s3, %s1640_s30  ;;  %s1645_s8 = sshll.u32 %s1819_s29, 4  ;;  %s1646_s8 = int_to_ptr.vmem [resolvable:$false] %s1645_s8 }
  0x96   : > { %s1647_s25 = scalar_lea.vmem %s1646_s8, 512  ;;  %p1648_p13 = scmp.lt.s32.totalorder %s2101_s3, %s1646_s8 }
  0x97   : > { %p1643_p2 = pnand %p1641_p1, %p1943_p11  ;;  %p1649_p4 = scmp.lt.s32.totalorder %s1647_s25, %s1640_s30 }
  0x99   : > { %p1644_p3 = pneg %p1643_p2  ;;  %p1650_p8 = por %p1649_p4, %p1648_p13 }
  0x9b   : > { %p1651_p7 = pnand %p1650_p8, %p1644_p3 }
  0x9d   : > { %1654 = shalt.err (!%p1651_p7)
}
  0x9e   : > { %s2593_s12 = scalar_lea.sflag [#allocation5], %s1927_s19  ;;  %s2133_s27 = scalar_lea.hbm %s2567_s4, %s1974_s13 }
  0x9f   : > { %1380 = dma.hbm_to_vmem [thread:$0]  (!%p1922_p9), %s2098_s24, 256, %s2101_s3, %s2593_s12, %s1815_s1, %s1815_s1, %s1816_s16  }
  0xa0   : > { %s404_s30 = scalar_lea.vmem [#allocation9], %s1971_s11  ;;  %s1655_s8 = scalar_lea.hbm %s2133_s27, 256 }
  0xa1   : > { %s412_s29 = sshll.u32 %s404_s30, 4  ;;  %p1656_p6 = scmp.ne.s32.totalorder %s2133_s27, %s1655_s8  ;;  %s2136_s29 = int_to_ptr.vmem [resolvable:$true] %s412_s29 }
  0xa2   : > { %s1660_s3 = scalar_lea.hbm %s2567_s4, 512  ;;  %p1661_p0 = scmp.lt.u32.totalorder %s2133_s27, %s2567_s4 }
  0xa3   : > { %p1658_p5 = pnand %p1656_p6, %p1943_p11  ;;  %p1662_p10 = scmp.lt.u32.totalorder %s1660_s3, %s1655_s8 }
  0xa4   : > { %p1664_p2 = scmp.lt.u32.totalorder %s1655_s8, %s2133_s27 }
  0xa5   : > { %p1659_p12 = pneg %p1658_p5  ;;  %p1663_p1 = por %p1662_p10, %p1661_p0 }
  0xa7   : > { %p1665_p3 = por %p1664_p2, %p1663_p1 }
  0xa9   : > { %p1666_p13 = pnand %p1665_p3, %p1659_p12 }
  0xab   : > { %1669 = shalt.err (!%p1666_p13)
}
  0xac   : > { %s1670_s11 = scalar_lea.vmem %s2136_s29, 256  ;;  %s1820_s22 = smov [#allocation9]  }
  0xad   : > { %p1671_p4 = scmp.ne.s32.totalorder %s2136_s29, %s1670_s11  ;;  %s1675_s26 = sshll.u32 %s1820_s22, 4  ;;  %s1676_s26 = int_to_ptr.vmem [resolvable:$false] %s1675_s26 }
  0xae   : > { %s1677_s30 = scalar_lea.vmem %s1676_s26, 512  ;;  %p1678_p6 = scmp.lt.s32.totalorder %s2136_s29, %s1676_s26 }
  0xaf   : > { %p1673_p8 = pnand %p1671_p4, %p1943_p11  ;;  %p1679_p5 = scmp.lt.s32.totalorder %s1677_s30, %s1670_s11 }
  0xb1   : > { %p1674_p7 = pneg %p1673_p8  ;;  %p1680_p0 = por %p1679_p5, %p1678_p6 }
  0xb3   : > { %p1681_p10 = pnand %p1680_p0, %p1674_p7 }
  0xb5   : > { %1684 = shalt.err (!%p1681_p10)
}
  0xb6   : > { %s2594_s8 = scalar_lea.sflag [#allocation8], %s1927_s19  ;;  %s2168_s3 = scalar_lea.hbm %s2569_s6, %s2020_s21 }
  0xb7   : > { %1386 = dma.hbm_to_vmem [thread:$0]  (!%p1922_p9), %s2133_s27, 256, %s2136_s29, %s2594_s8, %s1815_s1, %s1815_s1, %s1816_s16  }
  0xb8   : > { %s448_s12 = scalar_lea.vmem [#allocation12], %s1988_s20  ;;  %s1685_s11 = scalar_lea.hbm %s2168_s3, 512 }
  0xb9   : > { %s456_s13 = sshll.u32 %s448_s12, 4  ;;  %p1686_p12 = scmp.ne.s32.totalorder %s2168_s3, %s1685_s11  ;;  %s2171_s13 = int_to_ptr.vmem [resolvable:$true] %s456_s13 }
  0xba   : > { %s1690_s29 = scalar_lea.hbm %s2569_s6, 1024  ;;  %p1691_p3 = scmp.lt.u32.totalorder %s2168_s3, %s2569_s6 }
  0xbb   : > { %p1688_p1 = pnand %p1686_p12, %p1943_p11  ;;  %p1692_p13 = scmp.lt.u32.totalorder %s1690_s29, %s1685_s11 }
  0xbc   : > { %p1694_p8 = scmp.lt.u32.totalorder %s1685_s11, %s2168_s3 }
  0xbd   : > { %p1689_p2 = pneg %p1688_p1  ;;  %p1693_p4 = por %p1692_p13, %p1691_p3 }
  0xbf   : > { %p1695_p7 = por %p1694_p8, %p1693_p4 }
  0xc1   : > { %p1696_p6 = pnand %p1695_p7, %p1689_p2 }
  0xc3   : > { %1699 = shalt.err (!%p1696_p6)
}
  0xc4   : > { %s1700_s8 = scalar_lea.vmem %s2171_s13, 512  ;;  %s1821_s25 = smov [#allocation12]  }
  0xc5   : > { %p1701_p5 = scmp.ne.s32.totalorder %s2171_s13, %s1700_s8  ;;  %s1705_s24 = sshll.u32 %s1821_s25, 4  ;;  %s1706_s24 = int_to_ptr.vmem [resolvable:$false] %s1705_s24 }
  0xc6   : > { %s1707_s12 = scalar_lea.vmem %s1706_s24, 1024  ;;  %p1708_p12 = scmp.lt.s32.totalorder %s2171_s13, %s1706_s24 }
  0xc7   : > { %p1703_p0 = pnand %p1701_p5, %p1943_p11  ;;  %p1709_p1 = scmp.lt.s32.totalorder %s1707_s12, %s1700_s8 }
  0xc9   : > { %p1704_p10 = pneg %p1703_p0  ;;  %p1710_p3 = por %p1709_p1, %p1708_p12 }
  0xcb   : > { %p1711_p13 = pnand %p1710_p3, %p1704_p10 }
  0xcd   : > { %1714 = shalt.err (!%p1711_p13)
}
  0xce   : > { %s2595_s11 = scalar_lea.sflag [#allocation11], %s1927_s19  ;;  %s2203_s29 = scalar_lea.hbm %s2570_s7, %s2020_s21 }
  0xcf   : > { %1392 = dma.hbm_to_vmem [thread:$0]  (!%p1922_p9), %s2168_s3, 512, %s2171_s13, %s2595_s11, %s1815_s1, %s1815_s1, %s1816_s16  }
  0xd0   : > { %s470_s26 = scalar_lea.vmem [#allocation13], %s1988_s20  ;;  %s467_s19 = scalar_lea.sflag [#allocation14], %s1920_s17 }
  0xd1   : > { %s478_s30 = sshll.u32 %s470_s26, 4  ;;  %s1715_s8 = scalar_lea.hbm %s2203_s29, 512  ;;  %s2206_s30 = int_to_ptr.vmem [resolvable:$true] %s478_s30 }
  0xd2   : > { %p1716_p2 = scmp.ne.s32.totalorder %s2203_s29, %s1715_s8  ;;  %s1720_s25 = scalar_lea.hbm %s2570_s7, 1024 }
  0xd3   : > { %p1721_p7 = scmp.lt.u32.totalorder %s2203_s29, %s2570_s7  ;;  %p1722_p6 = scmp.lt.u32.totalorder %s1720_s25, %s1715_s8 }
  0xd4   : > { %p1718_p4 = pnand %p1716_p2, %p1943_p11  ;;  %p1724_p0 = scmp.lt.u32.totalorder %s1715_s8, %s2203_s29 }
  0xd5   : > { %p1723_p5 = por %p1722_p6, %p1721_p7 }
  0xd6   : > { %p1719_p8 = pneg %p1718_p4 }
  0xd7   : > { %p1725_p10 = por %p1724_p0, %p1723_p5 }
  0xd9   : > { %p1726_p12 = pnand %p1725_p10, %p1719_p8 }
  0xdb   : > { %1729 = shalt.err (!%p1726_p12)
}
  0xdc   : > { %s1730_s20 = scalar_lea.vmem %s2206_s30, 512  ;;  %s1822_s12 = smov [#allocation13]  }
  0xdd   : > { %p1731_p1 = scmp.ne.s32.totalorder %s2206_s30, %s1730_s20  ;;  %s1735_s11 = sshll.u32 %s1822_s12, 4  ;;  %s1736_s11 = int_to_ptr.vmem [resolvable:$false] %s1735_s11 }
  0xde   : > { %s1737_s22 = scalar_lea.vmem %s1736_s11, 1024  ;;  %p1738_p2 = scmp.lt.s32.totalorder %s2206_s30, %s1736_s11 }
  0xdf   : > { %p1733_p3 = pnand %p1731_p1, %p1943_p11  ;;  %p1739_p4 = scmp.lt.s32.totalorder %s1737_s22, %s1730_s20 }
  0xe1   : > { %p1734_p13 = pneg %p1733_p3  ;;  %p1740_p7 = por %p1739_p4, %p1738_p2 }
  0xe3   : > { %p1741_p6 = pnand %p1740_p7, %p1734_p13 }
  0xe5   : > { %1744 = shalt.err (!%p1741_p6)
}
  0xe6   : > { %1395 = dma.hbm_to_vmem [thread:$0]  (!%p1922_p9), %s2203_s29, 512, %s2206_s30, %s467_s19, %s1815_s1, %s1815_s1, %s1816_s16  }
  0xe7   : > { %p2596_p11 = scmp.ne.s32.totalorder %s2591_s23, 0 }
  0xe8   : > { %s492_s14 = sand.u32 (!%p2596_p11), 1, %s1795_s28   ;;  %p2597_p8 = scmp.ne.s32.totalorder (!%p2596_p11), %s2586_s15, 0 }
  0xe9   : > { %490 = sbr.rel (%p2596_p11) target bundleno = 374 (0x176), region = 52  ;;  %s2238_s27 = sshll.u32 (!%p2596_p11), %s492_s14, 4 }
  0xea   : > { %s493_s26 = scalar_lea.sflag (!%p2596_p11), [#allocation3], %s492_s14  ;;  %s496_s8 = scalar_lea.vmem (!%p2596_p11), [#allocation2], %s2238_s27 }
  0xf0   : > { %1770 = dma.done.wait (%p2597_p8), %s493_s26, 256  }
  0xf1   : > { %1772 = vsyncadd (%p2597_p8), %s493_s26, 4294967040  ;;  %s2598_s17 = sadd.s32 4294967295, %s1811_s10   ;;  %s1307_s1 = sshll.u32 %s492_s14, 3 }
  0xf2   : > { %s501_s18 = sand.u32 1, %s2598_s17   ;;  %s2247_s16 = scalar_lea.vmem [#allocation4], %s1307_s1 }
  0xf3   : > { %s502_s23 = scalar_lea.sflag [#allocation5], %s501_s18 }
  0xf4   : > { %1774 = dma.done.wait (%p2597_p8), %s502_s23, 384  }
  0xf5   : > { %1776 = vsyncadd (%p2597_p8), %s502_s23, 4294966912  ;;  %s514_s29 = scalar_lea.vmem [#allocation6], %s2238_s27  ;;  %s520_s30 = scalar_lea.sflag [#allocation8], %s501_s18 }
  0xf6   : > { %s523_s19 = scalar_lea.vmem [#allocation7], %s2238_s27 }
  0xf7   : > { %1778 = dma.done.wait (%p2597_p8), %s520_s30, 512  }
  0xf8   : > { %1780 = vsyncadd (%p2597_p8), %s520_s30, 4294966784  ;;  %s1311_s3 = sshll.u32 %s492_s14, 5  ;;  %s532_s13 = scalar_lea.vmem [#allocation9], %s2238_s27 }
  0xf9   : > { %s538_s25 = scalar_lea.sflag [#allocation11], %s501_s18  ;;  %s541_s21 = scalar_lea.vmem [#allocation10], %s1311_s3 }
  0xfa   : > { %1782 = dma.done.wait (%p2597_p8), %s538_s25, 1024  }
  0xfb   : > { %1784 = vsyncadd (%p2597_p8), %s538_s25, 4294966272  ;;  %s2264_s24 = scalar_lea.vmem [#allocation12], %s1311_s3  ;;  %s556_s20 = scalar_lea.sflag [#allocation14], %s492_s14 }
  0xfc   : > { %s2266_s12 = scalar_lea.vmem [#allocation13], %s1311_s3 }
  0xfd   : > { %1786 = dma.done.wait (%p2597_p8), %s556_s20, 512  }
  0xfe   : > { %1788 = vsyncadd (%p2597_p8), %s556_s20, 4294966784  ;;  %v2272_v0 = vld [vmem:[%s496_s8] sm:$0xff]  ;;  %v2274_v1 = vld [vmem:[%s496_s8 + $0x8] sm:$0xff]  ;;  %s2599_s15 = sld [smem:[#allocation21_spill]]  ;;  %s2602_s27 = sld [smem:[#allocation26_spill]]  ;;  %vm1824_vm12 = vmmov 1  }
  0xff   : > { %v644_v2 = vmul.f32 %v2272_v0, %v2272_v0  ;;  %v645_v3 = vmul.f32 %v2274_v1, %v2274_v1  ;;  %v674_v4 = vld [vmem:[%s514_s29] sm:$0xff]  ;;  %v1318_v5 = vld [vmem:[%s514_s29 + $0x8] sm:$0xff] }
 0x100   : > { %v2281_v6 = vsub.f32 %v2272_v0, %v674_v4  ;;  %v2284_v7 = vsub.f32 %v2274_v1, %v1318_v5  ;;  %v1320_v8 = vld [vmem:[%s541_s21 + $0x10] sm:$0xff]  ;;  %v1321_v9 = vld [vmem:[%s541_s21 + $0x18] sm:$0xff]  ;;  %v2288_v11 = vld [vmem:[%s541_s21] sm:$0xff] }
 0x101   : > { %v2286_v10 = vadd.f32 %v645_v3, %v644_v2  ;;  %v2290_v12 = vld [vmem:[%s541_s21 + $0x8] sm:$0xff]  ;;  %v682_v13 = vmax.f32 %v1320_v8, 0.0  ;;  %v1322_v14 = vclamps-f32 %v1321_v9, 0.0  ;;  %v788_v18 = vld [vmem:[%s523_s19] sm:$0xff]  ;;  %v2302_v19 = vld [vmem:[%s2247_s16] sm:$0xff] }
 0x102   : > { %v690_v15 = vmul.f32 %v2281_v6, %v2281_v6  ;;  %v691_v16 = vmul.f32 %v2284_v7, %v2284_v7  ;;  %v701_v17 = vsub.f32 %v2288_v11, %v2290_v12  ;;  %v1327_v24 = vld [vmem:[%s523_s19 + $0x8] sm:$0xff]  ;;  %v1329_v25 = vld [vmem:[%s2264_s24 + $0x10] sm:$0xff]  ;;  %v2312_v27 = vsub.f32 %v2272_v0, %v788_v18  ;;  %v2322_v34 = vld [vmem:[%s2264_s24] sm:$0xff] }
 0x103   : > { %1449 = vrsqrt.f32 %v2286_v10  ;;  %v683_v21 = vmin.f32 %v682_v13, 10.0  ;;  %v717_v23 = vsub.f32 0.0, %v1322_v14  ;;  %v1330_v26 = vld [vmem:[%s2264_s24 + $0x18] sm:$0xff]  ;;  %v1323_v29 = vadd.f32 -0.6931472, %v2288_v11  ;;  %v2327_v39 = vld [vmem:[%s2264_s24 + $0x8] sm:$0xff] }
 0x104   : > { %v2304_v20 = vadd.f32 %v691_v16, %v690_v15  ;;  %v702_v22 = vand.u32 2147483647, %v701_v17  ;;  %vm654_vm0 = vcmp.ge.f32.partialorder %v2302_v19, 0.5  ;;  %v2317_v32 = vsub.f32 %v2274_v1, %v1327_v24  ;;  %v902_v63 = vld [vmem:[%s532_s13] sm:$0xff]  ;;  %v1336_v2 = vld [vmem:[%s532_s13 + $0x8] sm:$0xff]  ;;  %p631_p9 = scmp.lt.s32.totalorder %s2599_s15, 1 }
 0x105   : > { %v714_v30 = vsub.f32 0.0, %v683_v21  ;;  %v718_v31 = vmul.f32 1.442695, %v717_v23  ;;  %v804_v33 = vmul.f32 %v2312_v27, %v2312_v27  ;;  %v796_v35 = vmax.f32 %v1329_v25, 0.0 }
 0x106   : > { %1451 = vrsqrt.f32 %v2304_v20  ;;  %v703_v28 = vsub.f32 0.0, %v702_v22  ;;  %v1331_v36 = vclamps-f32 %v1330_v26, 0.0  ;;  %vm649_vm1 = vcmp.eq.f32.partialorder %v2286_v10, inf  ;;  %s2613_s15 = smov (!%p631_p9, %s2599_s15), 1 }
 0x107   : > { %v1324_v37 = vadd.f32 -0.6931472, %v2290_v12  ;;  %v715_v38 = vmul.f32 1.442695, %v714_v30  ;;  %1453 = vpow2.f32 %v718_v31  ;;  %vm651_vm2 = vcmp.eq.f32.partialorder %v2286_v10, 0.0  ;;  %s1354_s11 = sshll.u32 %s2613_s15, 4 }
 0x108   : > { %v805_v40 = vmul.f32 %v2317_v32, %v2317_v32  ;;  %v797_v41 = vmin.f32 %v796_v35, 10.0  ;;  %v815_v42 = vsub.f32 %v2322_v34, %v2327_v39  ;;  %v652_v43 = vand.u32 2147483648, %v2286_v10  ;;  %v1338_v35 = vld [vmem:[%s2266_s12 + $0x10] sm:$0xff]  ;;  %s2426_s26 = scalar_lea.vmem %s2602_s27, %s1354_s11 }
 0x109   : > { %v720_v44 = vand.u32 2147483647, %v2281_v6  ;;  %v721_v45 = vand.u32 2147483647, %v2284_v7  ;;  %v831_v46 = vsub.f32 0.0, %v1331_v36  ;;  %1455 = vpow2.f32 %v715_v38 }
 0x10a   : > { %v704_v47 = vmul.f32 1.442695, %v703_v28  ;;  %v2337_v48 = vadd.f32 %v805_v40, %v804_v33  ;;  %v1332_v49 = vadd.f32 -0.6931472, %v2322_v34  ;;  %v713_v51 = vsub.f32 %v1324_v37, %v1322_v14 }
 0x10b   : > { %v1333_v52 = vadd.f32 -0.6931472, %v2327_v39  ;;  %v828_v53 = vsub.f32 0.0, %v797_v41  ;;  %v832_v54 = vmul.f32 1.442695, %v831_v46  ;;  %vm695_vm3 = vcmp.eq.f32.partialorder %v2304_v20, inf }
 0x10c   : > { %1457 = vrsqrt.f32 %v2337_v48  ;;  %v816_v56 = vand.u32 2147483647, %v815_v42  ;;  %vm697_vm4 = vcmp.eq.f32.partialorder %v2304_v20, 0.0  ;;  %v698_v57 = vand.u32 2147483648, %v2304_v20 }
 0x10d   : > { %v1450_v50 = vpop.eup %1449  ;;  %v829_v58 = vmul.f32 1.442695, %v828_v53  ;;  %1459 = vpow2.f32 %v832_v54  ;;  %v711_v61 = vsub.f32 %v1323_v29, %v683_v21  ;;  %v834_v62 = vand.u32 2147483647, %v2312_v27 }
 0x10e   : > { %v648_v55 = vmul.f32 %v1450_v50, %v2286_v10  ;;  %1461 = vpow2.f32 %v704_v47  ;;  %v2357_v5 = vsub.f32 %v1332_v49, %v797_v41  ;;  %v2359_v6 = vsub.f32 %v1333_v52, %v1331_v36 }
 0x10f   : > { %vm809_vm6 = vcmp.eq.f32.partialorder %v2337_v48, inf  ;;  %v817_v7 = vsub.f32 0.0, %v816_v56  ;;  %v835_v8 = vand.u32 2147483647, %v2317_v32  ;;  %1463 = vpow2.f32 %v829_v58 }
 0x110   : > { %v1452_v59 = vpop.eup %1451  ;;  %v650_v60 = vsel %vm649_vm1, %v2286_v10, %v648_v55  ;;  %v2374_v14 = vsub.f32 %v2272_v0, %v902_v63  ;;  %v2377_v15 = vsub.f32 %v2274_v1, %v1336_v2  ;;  %v1823_v16 = vmov 0.0  }
 0x111   : > { %v653_v3 = vsel %vm651_vm2, %v652_v43, %v650_v60  ;;  %v694_v4 = vmul.f32 %v1452_v59, %v2304_v20  ;;  %v1454_v9 = vpop.eup %1453  ;;  %vm811_vm8 = vcmp.eq.f32.partialorder %v2337_v48, 0.0  ;;  %v812_v40 = vand.u32 2147483648, %v2337_v48 }
 0x112   : > { %vm655_vm5 = vcmp.lt.f32.partialorder %v653_v3, 400.0  ;;  %v724_v21 = vmul.f32 %v1454_v9, %v720_v44  ;;  %v739_v1 = vmul.f32 %v1454_v9, %v721_v45  ;;  %v918_v28 = vmul.f32 %v2374_v14, %v2374_v14 }
 0x113   : > { %vm2366_vm7 = vmand %vm654_vm0, %vm655_vm5  ;;  %v696_v10 = vsel %vm695_vm3, %v2304_v20, %v694_v4  ;;  %v1456_v24 = vpop.eup %1455  ;;  %v919_v29 = vmul.f32 %v2377_v15, %v2377_v15  ;;  %v818_v50 = vmul.f32 1.442695, %v817_v7  ;;  %v910_v52 = vmax.f32 %v1338_v35, 0.0 }
 0x114   : > { %v1317_v17 = vsel %vm2366_vm7, 1.0, %v1823_v16  ;;  %v666_v18 = vsel %vm2366_vm7, %v653_v3, 0.0  ;;  %v699_v19 = vsel %vm697_vm4, %v698_v57, %v696_v10  ;;  %v2388_v26 = vsub.f32 %v713_v51, %v724_v21 }
 0x115   : > { %v659_v0 = vrot.slane %v1317_v17, 4  ;;  %v667_v22 = vrot.slane %v666_v18, 4  ;;  %v758_v23 = vsel %vm2366_vm7, %v699_v19, 0.0  ;;  %v722_v31 = vmul.f32 %v1456_v24, %v720_v44 }
 0x116   : > { %v759_v25 = vrot.slane %v758_v23, 4  ;;  %v737_v33 = vmul.f32 %v1456_v24, %v721_v45  ;;  %v1458_v36 = vpop.eup %1457  ;;  %v2400_v38 = vsub.f32 %v713_v51, %v739_v1  ;;  %v2412_v55 = vadd.f32 %v919_v29, %v918_v28  ;;  %v2442_v28 = vld [vmem:[%s2266_s12 + $0x18] sm:$0xff] }
 0x117   : > { %v660_v20 = vadd.f32 %v1317_v17, %v659_v0  ;;  %v668_v30 = vadd.f32 %v667_v22, %v666_v18  ;;  %v1460_v41 = vpop.eup %1459  ;;  %v2404_v46 = vsub.f32 %v711_v61, %v722_v31  ;;  %v808_v45 = vmul.f32 %v1458_v36, %v2337_v48 }
 0x118   : > { %v760_v37 = vadd.f32 %v759_v25, %v758_v23  ;;  %v2406_v47 = vsub.f32 %v711_v61, %v737_v33  ;;  %v1462_v49 = vpop.eup %1461  ;;  %v838_v59 = vmul.f32 %v1460_v41, %v834_v62  ;;  %v853_v10 = vmul.f32 %v1460_v41, %v835_v8 }
 0x119   : > { %v661_v42 = vrot.slane %v660_v20, 2  ;;  %v669_v43 = vrot.slane %v668_v30, 2  ;;  %v727_v54 = vsub.f32 %v2404_v46, %v2388_v26  ;;  %v810_v58 = vsel %vm809_vm6, %v2337_v48, %v808_v45  ;;  %v1464_v60 = vpop.eup %1463 }
 0x11a   : > { %v761_v44 = vrot.slane %v760_v37, 2  ;;  %v742_v57 = vsub.f32 %v2406_v47, %v2400_v38  ;;  %v813_v3 = vsel %vm811_vm8, %v812_v40, %v810_v58  ;;  %1465 = vpow2.f32 %v818_v50 }
 0x11b   : > { %v662_v51 = vadd.f32 %v661_v42, %v660_v20  ;;  %v670_v53 = vadd.f32 %v669_v43, %v668_v30  ;;  %v728_v2 = vand.u32 2147483647, %v727_v54  ;;  %v872_v9 = vsel %vm2366_vm7, %v813_v3, 0.0 }
 0x11c   : > { %v762_v56 = vadd.f32 %v761_v44, %v760_v37  ;;  %v743_v7 = vand.u32 2147483647, %v742_v57  ;;  %v873_v19 = vrot.slane %v872_v9, 4  ;;  %v836_v22 = vmul.f32 %v1464_v60, %v834_v62  ;;  %v2469_v57 = vld [vmem:[%s2266_s12 + $0x8] sm:$0xff] }
 0x11d   : > { %v663_v61 = vrot.slane %v662_v51, 1  ;;  %v671_v63 = vrot.slane %v670_v53, 1  ;;  %v729_v18 = vsub.f32 0.0, %v728_v2  ;;  %v2437_v24 = vsub.f32 %v2359_v6, %v838_v59 }
 0x11e   : > { %v763_v4 = vrot.slane %v762_v56, 1  ;;  %v744_v0 = vsub.f32 0.0, %v743_v7  ;;  %v874_v1 = vadd.f32 %v873_v19, %v872_v9  ;;  %v851_v25 = vmul.f32 %v1464_v60, %v835_v8 }
 0x11f   : > { %v664_v17 = vadd.f32 %v663_v61, %v662_v51  ;;  %v672_v48 = vadd.f32 %v671_v63, %v670_v53  ;;  %v730_v23 = vmul.f32 1.442695, %v729_v18  ;;  %v2446_v20 = vsub.f32 %v2357_v5, %v836_v22 }
 0x120   : > { %v764_v21 = vadd.f32 %v763_v4, %v762_v56  ;;  %v745_v29 = vmul.f32 1.442695, %v744_v0  ;;  %v2449_v27 = vsub.f32 %v2359_v6, %v853_v10  ;;  %1467 = vrsqrt.f32 %v2412_v55  ;;  %v2466_v56 = vld [vmem:[%s2266_s12] sm:$0xff] }
 0x121   : > { %665 = vst [vmem:[%s2426_s26] sm:$0x1] %v664_v17  ;;  %673 = vst [vmem:[%s2426_s26 + $0x1] sm:$0x1] %v672_v48  ;;  %1469 = vpow2.f32 %v730_v23  ;;  %v875_v62 = vrot.slane %v874_v1, 2  ;;  %v2453_v30 = vsub.f32 %v2357_v5, %v851_v25  ;;  %v911_v31 = vmin.f32 %v910_v52, 10.0 }
 0x122   : > { %765 = vst [vmem:[%s2426_s26 + $0x2] sm:$0x1] %v764_v21  ;;  %1471 = vpow2.f32 %v745_v29  ;;  %v841_v32 = vsub.f32 %v2446_v20, %v2437_v24  ;;  %v1340_v8 = vclamps-f32 %v2442_v28, 0.0  ;;  %v706_v35 = vadd.f32 1.0, %v1462_v49 }
 0x123   : > { %v876_v33 = vadd.f32 %v875_v62, %v874_v1  ;;  %v856_v6 = vsub.f32 %v2453_v30, %v2449_v27  ;;  %v942_v41 = vsub.f32 0.0, %v911_v31  ;;  %vm923_vm9 = vcmp.eq.f32.partialorder %v2412_v55, inf }
 0x124   : > { %v842_v36 = vand.u32 2147483647, %v841_v32  ;;  %v945_v5 = vsub.f32 0.0, %v1340_v8  ;;  %v1466_v50 = vpop.eup %1465  ;;  %1473 = vlog2.f32 %v706_v35  ;;  %v926_v54 = vand.u32 2147483648, %v2412_v55 }
 0x125   : > { %v877_v37 = vrot.slane %v876_v33, 1  ;;  %v857_v40 = vand.u32 2147483647, %v856_v6  ;;  %v943_v45 = vmul.f32 1.442695, %v942_v41  ;;  %vm925_vm10 = vcmp.eq.f32.partialorder %v2412_v55, 0.0 }
 0x126   : > { %v843_v42 = vsub.f32 0.0, %v842_v36  ;;  %v946_v49 = vmul.f32 1.442695, %v945_v5  ;;  %v929_v60 = vsub.f32 %v2466_v56, %v2469_v57  ;;  %v820_v2 = vadd.f32 1.0, %v1466_v50 }
 0x127   : > { %v878_v43 = vadd.f32 %v877_v37, %v876_v33  ;;  %v858_v44 = vsub.f32 0.0, %v857_v40  ;;  %1475 = vpow2.f32 %v943_v45  ;;  %v1341_v17 = vadd.f32 -0.6931472, %v2466_v56 }
 0x128   : > { %v844_v52 = vmul.f32 1.442695, %v843_v42  ;;  %v930_v10 = vand.u32 2147483647, %v929_v60  ;;  %v948_v18 = vand.u32 2147483647, %v2374_v14  ;;  %v700_v33 = vmax.f32 %v2288_v11, %v2290_v12 }
 0x129   : > { %879 = vst [vmem:[%s2426_s26 + $0x5] sm:$0x1] %v878_v43  ;;  %v859_v51 = vmul.f32 1.442695, %v858_v44  ;;  %v949_v19 = vand.u32 2147483647, %v2377_v15  ;;  %v939_v1 = vsub.f32 %v1341_v17, %v911_v31  ;;  %v726_v14 = vmax.f32 %v2404_v46, %v2388_v26 }
 0x12a   : > { %v1468_v53 = vpop.eup %1467  ;;  %1477 = vpow2.f32 %v844_v52  ;;  %v931_v23 = vsub.f32 0.0, %v930_v10  ;;  %v741_v31 = vmax.f32 %v2406_v47, %v2400_v38 }
 0x12b   : > { %v1470_v58 = vpop.eup %1469  ;;  %1479 = vpow2.f32 %v859_v51  ;;  %v922_v59 = vmul.f32 %v1468_v53, %v2412_v55 }
 0x12c   : > { %v1472_v61 = vpop.eup %1471  ;;  %v732_v63 = vadd.f32 1.0, %v1470_v58  ;;  %1481 = vpow2.f32 %v946_v49  ;;  %v932_v42 = vmul.f32 1.442695, %v931_v23  ;;  %v814_v58 = vmax.f32 %v2322_v34, %v2327_v39 }
 0x12d   : > { %v747_v3 = vadd.f32 1.0, %v1472_v61  ;;  %v924_v4 = vsel %vm923_vm9, %v2412_v55, %v922_v59  ;;  %v1342_v55 = vadd.f32 -0.6931472, %v2469_v57  ;;  %v855_v39 = vmax.f32 %v2453_v30, %v2449_v27 }
 0x12e   : > { %1483 = vlog2.f32 %v732_v63  ;;  %v927_v7 = vsel %vm925_vm10, %v926_v54, %v924_v4  ;;  %v1474_v21 = vpop.eup %1473 }
 0x12f   : > { %1485 = vlog2.f32 %v747_v3  ;;  %v986_v9 = vsel %vm2366_vm7, %v927_v7, 0.0  ;;  %v708_v6 = vmul.f32 0.6931472, %v1474_v21  ;;  %v941_v40 = vsub.f32 %v1342_v55, %v1340_v8 }
 0x130   : > { %1487 = vlog2.f32 %v820_v2  ;;  %v987_v48 = vrot.slane %v986_v9, 4  ;;  %v840_v3 = vmax.f32 %v2446_v20, %v2437_v24 }
 0x131   : > { %v1476_v22 = vpop.eup %1475  ;;  %v709_v46 = vadd.f32 %v708_v6, %v700_v33 }
 0x132   : > { %v988_v0 = vadd.f32 %v987_v48, %v986_v9  ;;  %v950_v62 = vmul.f32 %v1476_v22, %v948_v18  ;;  %v965_v36 = vmul.f32 %v1476_v22, %v949_v19 }
 0x134   : > { %v1478_v25 = vpop.eup %1477  ;;  %v989_v29 = vrot.slane %v988_v0, 2  ;;  %v2490_v5 = vsub.f32 %v939_v1, %v950_v62  ;;  %v2492_v50 = vsub.f32 %v939_v1, %v965_v36 }
 0x135   : > { %v1480_v32 = vpop.eup %1479  ;;  %v846_v35 = vadd.f32 1.0, %v1478_v25 }
 0x136   : > { %v861_v15 = vadd.f32 1.0, %v1480_v32  ;;  %v990_v37 = vadd.f32 %v989_v29, %v988_v0  ;;  %v1482_v41 = vpop.eup %1481 }
 0x137   : > { %1489 = vlog2.f32 %v846_v35  ;;  %v952_v43 = vmul.f32 %v1482_v41, %v948_v18  ;;  %v967_v44 = vmul.f32 %v1482_v41, %v949_v19 }
 0x138   : > { %v1484_v11 = vpop.eup %1483  ;;  %1491 = vlog2.f32 %v861_v15  ;;  %v991_v12 = vrot.slane %v990_v37, 1 }
 0x139   : > { %v1486_v26 = vpop.eup %1485  ;;  %v734_v45 = vmul.f32 0.6931472, %v1484_v11  ;;  %v2494_v51 = vsub.f32 %v941_v40, %v952_v43  ;;  %v2496_v38 = vsub.f32 %v941_v40, %v967_v44  ;;  %1493 = vpow2.f32 %v932_v42 }
 0x13a   : > { %v1488_v28 = vpop.eup %1487  ;;  %v749_v8 = vmul.f32 0.6931472, %v1486_v26  ;;  %v992_v52 = vadd.f32 %v991_v12, %v990_v37 }
 0x13b   : > { %v735_v47 = vadd.f32 %v734_v45, %v726_v14  ;;  %v955_v53 = vsub.f32 %v2490_v5, %v2494_v51  ;;  %v822_v59 = vmul.f32 0.6931472, %v1488_v28  ;;  %v970_v60 = vsub.f32 %v2492_v50, %v2496_v38 }
 0x13c   : > { %v750_v49 = vadd.f32 %v749_v8, %v741_v31  ;;  %993 = vst [vmem:[%s2426_s26 + $0x8] sm:$0x1] %v992_v52 }
 0x13d   : > { %v736_v54 = vsub.f32 %v709_v46, %v735_v47  ;;  %v956_v63 = vand.u32 2147483647, %v955_v53  ;;  %v971_v2 = vand.u32 2147483647, %v970_v60  ;;  %v823_v34 = vadd.f32 %v822_v59, %v814_v58 }
 0x13e   : > { %v751_v61 = vsub.f32 %v709_v46, %v750_v49 }
 0x13f   : > { %vm752_vm11 = vweird.f32 %v736_v54  ;;  %v957_v4 = vsub.f32 0.0, %v956_v63  ;;  %v972_v9 = vsub.f32 0.0, %v971_v2 }
 0x140   : > { %vm753_vm13 = vmxor %vm752_vm11, %vm1824_vm12  ;;  %vm755_vm14 = vweird.f32 %v751_v61 }
 0x141   : > { %v1490_v7 = vpop.eup %1489  ;;  %vm754_vm15 = vmand %vm2366_vm7, %vm753_vm13  ;;  %v958_v19 = vmul.f32 1.442695, %v957_v4  ;;  %v973_v20 = vmul.f32 1.442695, %v972_v9 }
 0x142   : > { %v1492_v10 = vpop.eup %1491  ;;  %vm756_vm0 = vmxor %vm755_vm14, %vm1824_vm12  ;;  %v766_v17 = vsel %vm754_vm15, %v736_v54, 0.0  ;;  %v1325_v48 = vsel %vm754_vm15, 1.0, %v1823_v16  ;;  %v848_v18 = vmul.f32 0.6931472, %v1490_v7 }
 0x143   : > { %vm757_vm1 = vmand %vm2366_vm7, %vm756_vm0  ;;  %v863_v24 = vmul.f32 0.6931472, %v1492_v10  ;;  %v1494_v22 = vpop.eup %1493  ;;  %1495 = vpow2.f32 %v958_v19  ;;  %v969_v10 = vmax.f32 %v2492_v50, %v2496_v38 }
 0x144   : > { %v767_v21 = vsel %vm757_vm1, %v751_v61, 0.0  ;;  %v1326_v0 = vsel %vm757_vm1, 1.0, %v1823_v16  ;;  %v849_v55 = vadd.f32 %v848_v18, %v840_v3  ;;  %1497 = vpow2.f32 %v973_v20 }
 0x145   : > { %v768_v27 = vadd.f32 %v767_v21, %v766_v17  ;;  %v780_v30 = vadd.f32 %v1326_v0, %v1325_v48  ;;  %v864_v23 = vadd.f32 %v863_v24, %v855_v39  ;;  %v934_v32 = vadd.f32 1.0, %v1494_v22 }
 0x146   : > { %v850_v1 = vsub.f32 %v823_v34, %v849_v55  ;;  %v928_v3 = vmax.f32 %v2466_v56, %v2469_v57  ;;  %v954_v39 = vmax.f32 %v2490_v5, %v2494_v51 }
 0x147   : > { %v769_v25 = vrot.slane %v768_v27, 4  ;;  %v781_v29 = vrot.slane %v780_v30, 4  ;;  %v865_v62 = vsub.f32 %v823_v34, %v864_v23  ;;  %1499 = vlog2.f32 %v934_v32 }
 0x148   : > { %vm866_vm2 = vweird.f32 %v850_v1 }
 0x149   : > { %v770_v33 = vadd.f32 %v769_v25, %v768_v27  ;;  %v782_v6 = vadd.f32 %v781_v29, %v780_v30  ;;  %vm867_vm3 = vmxor %vm866_vm2, %vm1824_vm12  ;;  %vm869_vm4 = vweird.f32 %v865_v62 }
 0x14a   : > { %vm868_vm5 = vmand %vm2366_vm7, %vm867_vm3 }
 0x14b   : > { %v771_v35 = vrot.slane %v770_v33, 2  ;;  %v783_v36 = vrot.slane %v782_v6, 2  ;;  %vm870_vm6 = vmxor %vm869_vm4, %vm1824_vm12  ;;  %v880_v14 = vsel %vm868_vm5, %v850_v1, 0.0  ;;  %v1334_v15 = vsel %vm868_vm5, 1.0, %v1823_v16 }
 0x14c   : > { %vm871_vm8 = vmand %vm2366_vm7, %vm870_vm6 }
 0x14d   : > { %v772_v37 = vadd.f32 %v771_v35, %v770_v33  ;;  %v784_v40 = vadd.f32 %v783_v36, %v782_v6  ;;  %v881_v41 = vsel %vm871_vm8, %v865_v62, 0.0  ;;  %v1335_v31 = vsel %vm871_vm8, 1.0, %v1823_v16  ;;  %v1496_v12 = vpop.eup %1495 }
 0x14e   : > { %v882_v42 = vadd.f32 %v881_v41, %v880_v14  ;;  %v894_v11 = vadd.f32 %v1335_v31, %v1334_v15  ;;  %v1498_v26 = vpop.eup %1497  ;;  %v960_v28 = vadd.f32 1.0, %v1496_v12 }
 0x14f   : > { %v773_v43 = vrot.slane %v772_v37, 1  ;;  %v785_v44 = vrot.slane %v784_v40, 1  ;;  %v975_v47 = vadd.f32 1.0, %v1498_v26 }
 0x150   : > { %v883_v46 = vrot.slane %v882_v42, 4  ;;  %v895_v45 = vrot.slane %v894_v11, 4  ;;  %1501 = vlog2.f32 %v960_v28 }
 0x151   : > { %v774_v8 = vadd.f32 %v773_v43, %v772_v37  ;;  %v786_v52 = vadd.f32 %v785_v44, %v784_v40  ;;  %1503 = vlog2.f32 %v975_v47  ;;  %v1500_v59 = vpop.eup %1499 }
 0x152   : > { %v884_v49 = vadd.f32 %v883_v46, %v882_v42  ;;  %v896_v53 = vadd.f32 %v895_v45, %v894_v11  ;;  %v936_v4 = vmul.f32 0.6931472, %v1500_v59 }
 0x153   : > { %775 = vst [vmem:[%s2426_s26 + $0x3] sm:$0x1] %v774_v8  ;;  %787 = vst [vmem:[%s2426_s26 + $0x4] sm:$0x1] %v786_v52 }
 0x154   : > { %v885_v54 = vrot.slane %v884_v49, 2  ;;  %v897_v58 = vrot.slane %v896_v53, 2  ;;  %v937_v48 = vadd.f32 %v936_v4, %v928_v3 }
 0x156   : > { %v886_v60 = vadd.f32 %v885_v54, %v884_v49  ;;  %v898_v61 = vadd.f32 %v897_v58, %v896_v53 }
 0x158   : > { %v887_v63 = vrot.slane %v886_v60, 1  ;;  %v899_v2 = vrot.slane %v898_v61, 1 }
 0x15a   : > { %v888_v7 = vadd.f32 %v887_v63, %v886_v60  ;;  %v900_v34 = vadd.f32 %v899_v2, %v898_v61  ;;  %v1502_v9 = vpop.eup %1501 }
 0x15b   : > { %v1504_v17 = vpop.eup %1503  ;;  %v962_v18 = vmul.f32 0.6931472, %v1502_v9 }
 0x15c   : > { %889 = vst [vmem:[%s2426_s26 + $0x6] sm:$0x1] %v888_v7  ;;  %901 = vst [vmem:[%s2426_s26 + $0x7] sm:$0x1] %v900_v34  ;;  %v977_v19 = vmul.f32 0.6931472, %v1504_v17 }
 0x15d   : > { %v963_v24 = vadd.f32 %v962_v18, %v954_v39 }
 0x15e   : > { %v978_v20 = vadd.f32 %v977_v19, %v969_v10 }
 0x15f   : > { %v964_v21 = vsub.f32 %v937_v48, %v963_v24 }
 0x160   : > { %v979_v56 = vsub.f32 %v937_v48, %v978_v20 }
 0x161   : > { %vm980_vm9 = vweird.f32 %v964_v21 }
 0x162   : > { %vm981_vm10 = vmxor %vm980_vm9, %vm1824_vm12  ;;  %vm983_vm11 = vweird.f32 %v979_v56 }
 0x163   : > { %vm982_vm13 = vmand %vm2366_vm7, %vm981_vm10 }
 0x164   : > { %vm984_vm14 = vmxor %vm983_vm11, %vm1824_vm12  ;;  %v994_v57 = vsel %vm982_vm13, %v964_v21, 0.0  ;;  %v1343_v5 = vsel %vm982_vm13, 1.0, %v1823_v16 }
 0x165   : > { %vm985_vm15 = vmand %vm2366_vm7, %vm984_vm14 }
 0x166   : > { %v995_v50 = vsel %vm985_vm15, %v979_v56, 0.0  ;;  %v1344_v51 = vsel %vm985_vm15, 1.0, %v1823_v16 }
 0x167   : > { %v996_v38 = vadd.f32 %v995_v50, %v994_v57  ;;  %v1008_v0 = vadd.f32 %v1344_v51, %v1343_v5 }
 0x169   : > { %v997_v55 = vrot.slane %v996_v38, 4  ;;  %v1009_v22 = vrot.slane %v1008_v0, 4 }
 0x16b   : > { %v998_v27 = vadd.f32 %v997_v55, %v996_v38  ;;  %v1010_v30 = vadd.f32 %v1009_v22, %v1008_v0 }
 0x16d   : > { %v999_v23 = vrot.slane %v998_v27, 2  ;;  %v1011_v1 = vrot.slane %v1010_v30, 2 }
 0x16f   : > { %v1000_v25 = vadd.f32 %v999_v23, %v998_v27  ;;  %v1012_v29 = vadd.f32 %v1011_v1, %v1010_v30 }
 0x171   : > { %v1001_v62 = vrot.slane %v1000_v25, 1  ;;  %v1013_v32 = vrot.slane %v1012_v29, 1 }
 0x173   : > { %v1002_v33 = vadd.f32 %v1001_v62, %v1000_v25  ;;  %v1014_v13 = vadd.f32 %v1013_v32, %v1012_v29 }
 0x175   : > { %1003 = vst [vmem:[%s2426_s26 + $0x9] sm:$0x1] %v1002_v33  ;;  %1015 = vst [vmem:[%s2426_s26 + $0xa] sm:$0x1] %v1014_v13 }
 0x176 PF: > { %s33_s10 = sadd.s32 1, %s1811_s10   ;;  %s2603_s8 = sld [smem:[#allocation20_spill]] }
 0x177   : > { %p30_p5 = scmp.ge.s32.totalorder %s33_s10, 4   ;;  %s2604_s29 = sld [smem:[#allocation23_spill]] }
 0x178   : > { %s2605_s17 = sld [smem:[#allocation22_spill]]  ;;  %s2606_s27 = smov %s1795_s28 }
 0x179   : > { %s2608_s30 = smov %s1807_s9  ;;  %32 = sbr.rel (!%p30_p5) target bundleno = 16 (0x10), region = 190 }
 0x17c   : > { %s2607_s28 = smov %s2603_s8 }
 0x17e   : > { %s2609_s9 = smov %s2605_s17 }
 0x180   :  { %1045 = vsyncpa [#allocation3], 1 }
 0x181   :  { %1047 = vsyncpa [#allocation3 + $0x1], 1 }
 0x182   :  { %1048 = vsyncpa [#allocation5], 1 }
 0x183   :  { %1050 = vsyncpa [#allocation5 + $0x1], 1 }
 0x184   :  { %1051 = vsyncpa [#allocation8], 1 }
 0x185   :  { %1053 = vsyncpa [#allocation8 + $0x1], 1 }
 0x186   :  { %1054 = vsyncpa [#allocation11], 1 }
 0x187   :  { %1056 = vsyncpa [#allocation11 + $0x1], 1 }
 0x188   :  { %1057 = vsyncpa [#allocation14], 1 }
 0x189   :  { %1059 = vsyncpa [#allocation14 + $0x1], 1 }

</bundles_post_ra>
